<compile_context>
chip_gen: v5e
topology: v5e:2x2
jax: 0.10.0
libtpu: 0.0.40
codegen_flags: <defaults>
</compile_context>

<pallas_src>
import jax
import jax.numpy as jnp
from jax.experimental import pallas as pl
from jax.experimental.pallas import tpu as pltpu


# ----------------------------------------------------------------------------
# Kernel
# ----------------------------------------------------------------------------
def _vae_kernel(x_ref, oh_ref, eps_ref,
                w1x_ref, w1c_ref, b1_ref,
                wmu_ref, bmu_ref,
                wlv_ref, blv_ref,
                w3z_ref, w3c_ref, b3_ref,
                w4_ref, b4_ref,
                out_ref, mulv_ref):
    f32 = jnp.float32
    bf16 = jnp.bfloat16

    x = x_ref[...]          # (tile_b, Dp)  bf16
    oh = oh_ref[...]        # (tile_b, Cp)  bf16 one-hot (zero-padded)

    # ---- encode:  h = relu(concat(x, onehot) @ W1 + b1)  (split matmul) ----
    h = (jnp.dot(x, w1x_ref[...], preferred_element_type=f32)
         + jnp.dot(oh, w1c_ref[...], preferred_element_type=f32)
         + b1_ref[...])
    h = jnp.maximum(h, 0.0)
    hb = h.astype(bf16)

    mu = jnp.dot(hb, wmu_ref[...], preferred_element_type=f32) + bmu_ref[...]
    logvar = jnp.dot(hb, wlv_ref[...], preferred_element_type=f32) + blv_ref[...]

    # ---- reparameterise (f32) ----
    std = jnp.exp(0.5 * logvar)
    z = mu + eps_ref[...] * std

    # ---- decode:  h2 = relu(concat(z, onehot) @ W3 + b3)  (split matmul) ----
    h2 = (jnp.dot(z.astype(bf16), w3z_ref[...], preferred_element_type=f32)
          + jnp.dot(oh, w3c_ref[...], preferred_element_type=f32)
          + b3_ref[...])
    h2 = jnp.maximum(h2, 0.0)
    logits = jnp.dot(h2.astype(bf16), w4_ref[...], preferred_element_type=f32) + b4_ref[...]

    out_ref[...] = jax.nn.sigmoid(logits)

    # mu / logvar packed into one lane-dense slab: [:, :Lp] = mu, [:, Lp:] = logvar
    Lp = mulv_ref.shape[1] // 2
    mulv_ref[:, :Lp] = mu
    mulv_ref[:, Lp:] = logvar


# ----------------------------------------------------------------------------
# Wrapper
# ----------------------------------------------------------------------------
def _round_up(n, m):
    return ((n + m - 1) // m) * m


def _pad2(a, rows, cols, dtype):
    """Zero-pad a 2-D array to (rows, cols) and cast."""
    out = jnp.zeros((rows, cols), dtype)
    return out.at[:a.shape[0], :a.shape[1]].set(a.astype(dtype))


def vae_forward(x, labels, eps, params, *, n_classes, tile_b=128):
    """Pallas conditional-VAE forward. Returns (output, mu, logvar) in f32."""
    B, image_dim = x.shape
    hidden_dim = params["w1"].shape[1]
    latent_dim = params["wmu"].shape[1]

    # 128-lane padded feature dims (lane-dense loads/stores, full MXU tiles)
    Dp = _round_up(image_dim, 128)
    Hp = _round_up(hidden_dim, 128)
    Lp = _round_up(latent_dim, 128)
    Cp = _round_up(n_classes, 128)

    # batch tiling (tile_b rows per grid step; batch zero-padded to a multiple)
    tile_b = min(tile_b, max(8, _round_up(B, 8)))
    Bp = _round_up(B, tile_b)

    bf16, f32 = jnp.bfloat16, jnp.float32

    # ---- padded / split inputs ----
    oh = jax.nn.one_hot(labels, n_classes, dtype=f32)
    xp = _pad2(x, Bp, Dp, bf16)
    ohp = _pad2(oh, Bp, Cp, bf16)
    epsp = _pad2(eps, Bp, Lp, f32)

    # ---- padded / split weights (zero padding => padded lanes contribute 0) ----
    w1 = params["w1"]                      # (image_dim + n_classes, hidden)
    w3 = params["w3"]                      # (latent_dim + n_classes, hidden)
    w1x = _pad2(w1[:image_dim], Dp, Hp, bf16)
    w1c = _pad2(w1[image_dim:], Cp, Hp, bf16)
    b1 = _pad2(params["b1"].reshape(1, -1), 1, Hp, f32)
    wmu = _pad2(params["wmu"], Hp, Lp, bf16)
    bmu = _pad2(params["bmu"].reshape(1, -1), 1, Lp, f32)
    wlv = _pad2(params["wlv"], Hp, Lp, bf16)
    blv = _pad2(params["blv"].reshape(1, -1), 1, Lp, f32)
    w3z = _pad2(w3[:latent_dim], Lp, Hp, bf16)
    w3c = _pad2(w3[latent_dim:], Cp, Hp, bf16)
    b3 = _pad2(params["b3"].reshape(1, -1), 1, Hp, f32)
    w4 = _pad2(params["w4"], Hp, Dp, bf16)
    b4 = _pad2(params["b4"].reshape(1, -1), 1, Dp, f32)

    weights = (w1x, w1c, b1, wmu, bmu, wlv, blv, w3z, w3c, b3, w4, b4)

    def batch_spec(feat):
        return pl.BlockSpec((tile_b, feat), lambda i: (i, 0))

    def full_spec(a):
        # constant index_map -> block stays resident across the grid
        return pl.BlockSpec(a.shape, lambda i: (0, 0))

    grid = (Bp // tile_b,)

    out_shapes = (
        jax.ShapeDtypeStruct((Bp, Dp), f32),        # sigmoid output (padded)
        jax.ShapeDtypeStruct((Bp, 2 * Lp), f32),    # [mu | logvar] slab (padded)
    )

    fn = pl.pallas_call(
        _vae_kernel,
        out_shape=out_shapes,
        grid_spec=pltpu.PrefetchScalarGridSpec(
            num_scalar_prefetch=0,
            grid=grid,
            in_specs=[batch_spec(Dp),      # x
                      batch_spec(Cp),      # one-hot labels
                      batch_spec(Lp),      # eps
                      ] + [full_spec(w) for w in weights],
            out_specs=[batch_spec(Dp),
                       batch_spec(2 * Lp)],
        ),
        compiler_params=pltpu.CompilerParams(
            dimension_semantics=("parallel",),      # batch shards across v7x TCs
            vmem_limit_bytes=48 * 1024 * 1024,      # fits v7x 64 MiB physical VMEM
        ),
    )
    out_p, mulv_p = fn(xp, ohp, epsp, *weights)

    out = out_p[:B, :image_dim]
    mu = mulv_p[:B, :latent_dim]
    logvar = mulv_p[:B, Lp:Lp + latent_dim]
    return out, mu, logvar


# ----------------------------------------------------------------------------
# Parameters / references
# ----------------------------------------------------------------------------
def init_params(key, image_dim, hidden_dim, latent_dim, n_classes):
    """Deterministic synthetic parameters, shapes matching the PyTorch module."""
    input_dim = image_dim + n_classes
    dec_in = latent_dim + n_classes
    ks = jax.random.split(key, 10)

    def lin(kw, kb, fan_in, fan_out):
        # stored as (in, out): torch weight (out, in) transposed
        w = jax.random.normal(kw, (fan_in, fan_out), jnp.float32) * (1.0 / jnp.sqrt(fan_in))
        b = jax.random.normal(kb, (fan_out,), jnp.float32) * 0.01
        return w, b

    w1, b1 = lin(ks[0], ks[1], input_dim, hidden_dim)
    wmu, bmu = lin(ks[2], ks[3], hidden_dim, latent_dim)
    wlv, blv = lin(ks[4], ks[5], hidden_dim, latent_dim)
    w3, b3 = lin(ks[6], ks[7], dec_in, hidden_dim)
    w4, b4 = lin(ks[8], ks[9], hidden_dim, image_dim)
    return dict(w1=w1, b1=b1, wmu=wmu, bmu=bmu, wlv=wlv, blv=blv,
                w3=w3, b3=b3, w4=w4, b4=b4)


def vae_forward_ref_f32(x, labels, eps, params, *, n_classes):
    """Pure-JAX f32 reference (exact PyTorch semantics)."""
    oh = jax.nn.one_hot(labels, n_classes, dtype=x.dtype)
    xc = jnp.concatenate([x, oh], axis=1)
    h = jax.nn.relu(xc @ params["w1"] + params["b1"])
    mu = h @ params["wmu"] + params["bmu"]
    logvar = h @ params["wlv"] + params["blv"]
    z = mu + eps * jnp.exp(0.5 * logvar)
    zc = jnp.concatenate([z, oh], axis=1)
    h2 = jax.nn.relu(zc @ params["w3"] + params["b3"])
    out = jax.nn.sigmoid(h2 @ params["w4"] + params["b4"])
    return out, mu, logvar


def vae_forward_ref_bf16(x, labels, eps, params, *, n_classes):
    """Reference mirroring the kernel's bf16 matmul inputs / f32 accumulation."""
    bf = jnp.bfloat16
    f32 = jnp.float32
    image_dim = x.shape[1]
    latent_dim = params["wmu"].shape[1]

    def mm(a, w):
        return jnp.dot(a.astype(bf), w.astype(bf), preferred_element_type=f32)

    oh = jax.nn.one_hot(labels, n_classes, dtype=f32)
    h = jax.nn.relu(mm(x, params["w1"][:image_dim])
                    + mm(oh, params["w1"][image_dim:]) + params["b1"])
    mu = mm(h, params["wmu"]) + params["bmu"]
    logvar = mm(h, params["wlv"]) + params["blv"]
    z = mu + eps * jnp.exp(0.5 * logvar)
    h2 = jax.nn.relu(mm(z, params["w3"][:latent_dim])
                     + mm(oh, params["w3"][latent_dim:]) + params["b3"])
    out = jax.nn.sigmoid(mm(h2, params["w4"]) + params["b4"])
    return out, mu, logvar


# ----------------------------------------------------------------------------
# Demo / self-test
# ----------------------------------------------------------------------------
if __name__ == "__main__":
    image_dim, hidden_dim, latent_dim, n_classes = 16, 32, 8, 4
    B = 256                      # 2 grid steps of tile_b=128 (both v7x TCs busy)

    key = jax.random.PRNGKey(0)
    k_params, k_x, k_lbl, k_eps = jax.random.split(key, 4)

    params = init_params(k_params, image_dim, hidden_dim, latent_dim, n_classes)
    x = jax.random.uniform(k_x, (B, image_dim), jnp.float32)
    labels = jax.random.randint(k_lbl, (B,), 0, n_classes)
    # torch.randn_like(std) is a fresh normal draw; drawn deterministically here
    # so the kernel can be validated bitwise-ish against a reference.
    # TODO(synk): could be generated in-kernel with pltpu.prng_* when an
    # externally-matched eps is not required.
    eps = jax.random.normal(k_eps, (B, latent_dim), jnp.float32)

    out, mu, logvar = jax.block_until_ready(
        vae_forward(x, labels, eps, params, n_classes=n_classes, tile_b=128))

    # exact-path check (same bf16 rounding as the kernel)
    out_b, mu_b, lv_b = vae_forward_ref_bf16(x, labels, eps, params, n_classes=n_classes)
    assert jnp.allclose(out, out_b, atol=5e-3), "mismatch vs bf16 reference (out)"
    assert jnp.allclose(mu, mu_b, atol=5e-3), "mismatch vs bf16 reference (mu)"
    assert jnp.allclose(logvar, lv_b, atol=5e-3), "mismatch vs bf16 reference (logvar)"

    # loose check vs the pure-f32 PyTorch-semantics reference
    out_r, mu_r, lv_r = vae_forward_ref_f32(x, labels, eps, params, n_classes=n_classes)
    assert jnp.allclose(out, out_r, atol=5e-2), "mismatch vs f32 reference (out)"
    assert jnp.allclose(mu, mu_r, atol=5e-2), "mismatch vs f32 reference (mu)"
    assert jnp.allclose(logvar, lv_r, atol=5e-2), "mismatch vs f32 reference (logvar)"

    print("KERNEL_OK")
</pallas_src>

<mosaic_0001>
module attributes {stable_mosaic.version = 11 : i64} {
  func.func @_vae_kernel(%arg0: i32, %arg1: memref<128x128xbf16, #tpu.memory_space<vmem>>, %arg2: memref<128x128xbf16, #tpu.memory_space<vmem>>, %arg3: memref<128x128xf32, #tpu.memory_space<vmem>>, %arg4: memref<128x128xbf16, #tpu.memory_space<vmem>>, %arg5: memref<128x128xbf16, #tpu.memory_space<vmem>>, %arg6: memref<1x128xf32, #tpu.memory_space<vmem>>, %arg7: memref<128x128xbf16, #tpu.memory_space<vmem>>, %arg8: memref<1x128xf32, #tpu.memory_space<vmem>>, %arg9: memref<128x128xbf16, #tpu.memory_space<vmem>>, %arg10: memref<1x128xf32, #tpu.memory_space<vmem>>, %arg11: memref<128x128xbf16, #tpu.memory_space<vmem>>, %arg12: memref<128x128xbf16, #tpu.memory_space<vmem>>, %arg13: memref<1x128xf32, #tpu.memory_space<vmem>>, %arg14: memref<128x128xbf16, #tpu.memory_space<vmem>>, %arg15: memref<1x128xf32, #tpu.memory_space<vmem>>, %arg16: memref<128x128xf32, #tpu.memory_space<vmem>>, %arg17: memref<128x256xf32, #tpu.memory_space<vmem>>) attributes {dimension_semantics = [#tpu.dimension_semantics<parallel>], iteration_bounds = array<i64: 2>, scalar_prefetch = 0 : i64, scratch_operands = 0 : i64, tpu.core_type = #tpu.core_type<tc>, window_params = [{transform_indices = @transform_0, window_bounds = array<i64: 128, 128>}, {transform_indices = @transform_1, window_bounds = array<i64: 128, 128>}, {transform_indices = @transform_2, window_bounds = array<i64: 128, 128>}, {pipeline_mode = #tpu.pipeline_mode<synchronous>, transform_indices = @transform_3, window_bounds = array<i64: 128, 128>}, {pipeline_mode = #tpu.pipeline_mode<synchronous>, transform_indices = @transform_4, window_bounds = array<i64: 128, 128>}, {pipeline_mode = #tpu.pipeline_mode<synchronous>, transform_indices = @transform_5, window_bounds = array<i64: 1, 128>}, {pipeline_mode = #tpu.pipeline_mode<synchronous>, transform_indices = @transform_6, window_bounds = array<i64: 128, 128>}, {pipeline_mode = #tpu.pipeline_mode<synchronous>, transform_indices = @transform_7, window_bounds = array<i64: 1, 128>}, {pipeline_mode = #tpu.pipeline_mode<synchronous>, transform_indices = @transform_8, window_bounds = array<i64: 128, 128>}, {pipeline_mode = #tpu.pipeline_mode<synchronous>, transform_indices = @transform_9, window_bounds = array<i64: 1, 128>}, {pipeline_mode = #tpu.pipeline_mode<synchronous>, transform_indices = @transform_10, window_bounds = array<i64: 128, 128>}, {pipeline_mode = #tpu.pipeline_mode<synchronous>, transform_indices = @transform_11, window_bounds = array<i64: 128, 128>}, {pipeline_mode = #tpu.pipeline_mode<synchronous>, transform_indices = @transform_12, window_bounds = array<i64: 1, 128>}, {pipeline_mode = #tpu.pipeline_mode<synchronous>, transform_indices = @transform_13, window_bounds = array<i64: 128, 128>}, {pipeline_mode = #tpu.pipeline_mode<synchronous>, transform_indices = @transform_14, window_bounds = array<i64: 1, 128>}, {transform_indices = @transform_15, window_bounds = array<i64: 128, 128>}, {transform_indices = @transform_16, window_bounds = array<i64: 128, 256>}]} {
    %c0 = arith.constant 0 : index
    %c0_0 = arith.constant 0 : index
    %0 = vector.load %arg1[%c0, %c0_0] : memref<128x128xbf16, #tpu.memory_space<vmem>>, vector<128x128xbf16>
    %c0_1 = arith.constant 0 : index
    %c0_2 = arith.constant 0 : index
    %1 = vector.load %arg2[%c0_1, %c0_2] : memref<128x128xbf16, #tpu.memory_space<vmem>>, vector<128x128xbf16>
    %c0_3 = arith.constant 0 : index
    %c0_4 = arith.constant 0 : index
    %2 = vector.load %arg4[%c0_3, %c0_4] : memref<128x128xbf16, #tpu.memory_space<vmem>>, vector<128x128xbf16>
    %cst = arith.constant dense<0.000000e+00> : vector<128x128xf32>
    %3 = tpu.matmul %0, %2, %cst {dimension_numbers = #tpu.dot_dimension_numbers<[1], [0], [0], [1], [0, 0, 1, 1], [], []>} : vector<128x128xbf16>, vector<128x128xbf16>, vector<128x128xf32> -> vector<128x128xf32>
    %c0_5 = arith.constant 0 : index
    %c0_6 = arith.constant 0 : index
    %4 = vector.load %arg5[%c0_5, %c0_6] : memref<128x128xbf16, #tpu.memory_space<vmem>>, vector<128x128xbf16>
    %cst_7 = arith.constant dense<0.000000e+00> : vector<128x128xf32>
    %5 = tpu.matmul %1, %4, %cst_7 {dimension_numbers = #tpu.dot_dimension_numbers<[1], [0], [0], [1], [0, 0, 1, 1], [], []>} : vector<128x128xbf16>, vector<128x128xbf16>, vector<128x128xf32> -> vector<128x128xf32>
    %6 = arith.addf %3, %5 : vector<128x128xf32>
    %c0_8 = arith.constant 0 : index
    %c0_9 = arith.constant 0 : index
    %7 = vector.load %arg6[%c0_8, %c0_9] : memref<1x128xf32, #tpu.memory_space<vmem>>, vector<1x128xf32>
    %8 = vector.broadcast %7 : vector<1x128xf32> to vector<128x128xf32>
    %9 = arith.addf %6, %8 : vector<128x128xf32>
    %cst_10 = arith.constant 0.000000e+00 : f32
    %10 = vector.broadcast %cst_10 : f32 to vector<128x128xf32>
    %11 = arith.maximumf %9, %10 : vector<128x128xf32>
    %12 = arith.truncf %11 : vector<128x128xf32> to vector<128x128xbf16>
    %c0_11 = arith.constant 0 : index
    %c0_12 = arith.constant 0 : index
    %13 = vector.load %arg7[%c0_11, %c0_12] : memref<128x128xbf16, #tpu.memory_space<vmem>>, vector<128x128xbf16>
    %cst_13 = arith.constant dense<0.000000e+00> : vector<128x128xf32>
    %14 = tpu.matmul %12, %13, %cst_13 {dimension_numbers = #tpu.dot_dimension_numbers<[1], [0], [0], [1], [0, 0, 1, 1], [], []>} : vector<128x128xbf16>, vector<128x128xbf16>, vector<128x128xf32> -> vector<128x128xf32>
    %c0_14 = arith.constant 0 : index
    %c0_15 = arith.constant 0 : index
    %15 = vector.load %arg8[%c0_14, %c0_15] : memref<1x128xf32, #tpu.memory_space<vmem>>, vector<1x128xf32>
    %16 = vector.broadcast %15 : vector<1x128xf32> to vector<128x128xf32>
    %17 = arith.addf %14, %16 : vector<128x128xf32>
    %c0_16 = arith.constant 0 : index
    %c0_17 = arith.constant 0 : index
    %18 = vector.load %arg9[%c0_16, %c0_17] : memref<128x128xbf16, #tpu.memory_space<vmem>>, vector<128x128xbf16>
    %cst_18 = arith.constant dense<0.000000e+00> : vector<128x128xf32>
    %19 = tpu.matmul %12, %18, %cst_18 {dimension_numbers = #tpu.dot_dimension_numbers<[1], [0], [0], [1], [0, 0, 1, 1], [], []>} : vector<128x128xbf16>, vector<128x128xbf16>, vector<128x128xf32> -> vector<128x128xf32>
    %c0_19 = arith.constant 0 : index
    %c0_20 = arith.constant 0 : index
    %20 = vector.load %arg10[%c0_19, %c0_20] : memref<1x128xf32, #tpu.memory_space<vmem>>, vector<1x128xf32>
    %21 = vector.broadcast %20 : vector<1x128xf32> to vector<128x128xf32>
    %22 = arith.addf %19, %21 : vector<128x128xf32>
    %cst_21 = arith.constant 5.000000e-01 : f32
    %23 = vector.broadcast %cst_21 : f32 to vector<128x128xf32>
    %24 = arith.mulf %23, %22 : vector<128x128xf32>
    %25 = math.exp %24 : vector<128x128xf32>
    %c0_22 = arith.constant 0 : index
    %c0_23 = arith.constant 0 : index
    %26 = vector.load %arg3[%c0_22, %c0_23] : memref<128x128xf32, #tpu.memory_space<vmem>>, vector<128x128xf32>
    %27 = arith.mulf %26, %25 : vector<128x128xf32>
    %28 = arith.addf %17, %27 : vector<128x128xf32>
    %29 = arith.truncf %28 : vector<128x128xf32> to vector<128x128xbf16>
    %c0_24 = arith.constant 0 : index
    %c0_25 = arith.constant 0 : index
    %30 = vector.load %arg11[%c0_24, %c0_25] : memref<128x128xbf16, #tpu.memory_space<vmem>>, vector<128x128xbf16>
    %cst_26 = arith.constant dense<0.000000e+00> : vector<128x128xf32>
    %31 = tpu.matmul %29, %30, %cst_26 {dimension_numbers = #tpu.dot_dimension_numbers<[1], [0], [0], [1], [0, 0, 1, 1], [], []>} : vector<128x128xbf16>, vector<128x128xbf16>, vector<128x128xf32> -> vector<128x128xf32>
    %c0_27 = arith.constant 0 : index
    %c0_28 = arith.constant 0 : index
    %32 = vector.load %arg12[%c0_27, %c0_28] : memref<128x128xbf16, #tpu.memory_space<vmem>>, vector<128x128xbf16>
    %cst_29 = arith.constant dense<0.000000e+00> : vector<128x128xf32>
    %33 = tpu.matmul %1, %32, %cst_29 {dimension_numbers = #tpu.dot_dimension_numbers<[1], [0], [0], [1], [0, 0, 1, 1], [], []>} : vector<128x128xbf16>, vector<128x128xbf16>, vector<128x128xf32> -> vector<128x128xf32>
    %34 = arith.addf %31, %33 : vector<128x128xf32>
    %c0_30 = arith.constant 0 : index
    %c0_31 = arith.constant 0 : index
    %35 = vector.load %arg13[%c0_30, %c0_31] : memref<1x128xf32, #tpu.memory_space<vmem>>, vector<1x128xf32>
    %36 = vector.broadcast %35 : vector<1x128xf32> to vector<128x128xf32>
    %37 = arith.addf %34, %36 : vector<128x128xf32>
    %cst_32 = arith.constant 0.000000e+00 : f32
    %38 = vector.broadcast %cst_32 : f32 to vector<128x128xf32>
    %39 = arith.maximumf %37, %38 : vector<128x128xf32>
    %40 = arith.truncf %39 : vector<128x128xf32> to vector<128x128xbf16>
    %c0_33 = arith.constant 0 : index
    %c0_34 = arith.constant 0 : index
    %41 = vector.load %arg14[%c0_33, %c0_34] : memref<128x128xbf16, #tpu.memory_space<vmem>>, vector<128x128xbf16>
    %cst_35 = arith.constant dense<0.000000e+00> : vector<128x128xf32>
    %42 = tpu.matmul %40, %41, %cst_35 {dimension_numbers = #tpu.dot_dimension_numbers<[1], [0], [0], [1], [0, 0, 1, 1], [], []>} : vector<128x128xbf16>, vector<128x128xbf16>, vector<128x128xf32> -> vector<128x128xf32>
    %c0_36 = arith.constant 0 : index
    %c0_37 = arith.constant 0 : index
    %43 = vector.load %arg15[%c0_36, %c0_37] : memref<1x128xf32, #tpu.memory_space<vmem>>, vector<1x128xf32>
    %44 = vector.broadcast %43 : vector<1x128xf32> to vector<128x128xf32>
    %45 = arith.addf %42, %44 : vector<128x128xf32>
    %46 = arith.negf %45 : vector<128x128xf32>
    %47 = math.exp %46 : vector<128x128xf32>
    %cst_38 = arith.constant 1.000000e+00 : f32
    %48 = vector.broadcast %cst_38 : f32 to vector<128x128xf32>
    %49 = arith.addf %48, %47 : vector<128x128xf32>
    %50 = arith.divf %48, %49 : vector<128x128xf32>
    %c0_39 = arith.constant 0 : index
    %c0_40 = arith.constant 0 : index
    %51 = vector.load %arg16[%c0_39, %c0_40] : memref<128x128xf32, #tpu.memory_space<vmem>>, vector<128x128xf32>
    tpu.vector_store %arg16[%c0_39, %c0_40], %50 {strides = array<i32>} : memref<128x128xf32, #tpu.memory_space<vmem>>, vector<128x128xf32>,
    %c0_41 = arith.constant 0 : index
    %c0_42 = arith.constant 0 : index
    %52 = vector.load %arg17[%c0_41, %c0_42] : memref<128x256xf32, #tpu.memory_space<vmem>>, vector<128x128xf32>
    tpu.vector_store %arg17[%c0_41, %c0_42], %17 {strides = array<i32>} : memref<128x256xf32, #tpu.memory_space<vmem>>, vector<128x128xf32>,
    %c0_43 = arith.constant 0 : index
    %c128 = arith.constant 128 : index
    %53 = vector.load %arg17[%c0_43, %c128] : memref<128x256xf32, #tpu.memory_space<vmem>>, vector<128x128xf32>
    tpu.vector_store %arg17[%c0_43, %c128], %22 {strides = array<i32>} : memref<128x256xf32, #tpu.memory_space<vmem>>, vector<128x128xf32>,
    return
  }
  func.func @transform_0(%arg0: i32) -> (i32, i32) {
    %c0_i32 = arith.constant 0 : i32
    %c0_i32_0 = arith.constant 0 : i32
    return %arg0, %c0_i32 : i32, i32
  }
  func.func @transform_1(%arg0: i32) -> (i32, i32) {
    %c0_i32 = arith.constant 0 : i32
    %c0_i32_0 = arith.constant 0 : i32
    return %arg0, %c0_i32 : i32, i32
  }
  func.func @transform_2(%arg0: i32) -> (i32, i32) {
    %c0_i32 = arith.constant 0 : i32
    %c0_i32_0 = arith.constant 0 : i32
    return %arg0, %c0_i32 : i32, i32
  }
  func.func @transform_3(%arg0: i32) -> (i32, i32) {
    %c0_i32 = arith.constant 0 : i32
    %c0_i32_0 = arith.constant 0 : i32
    %c0_i32_1 = arith.constant 0 : i32
    return %c0_i32, %c0_i32_0 : i32, i32
  }
  func.func @transform_4(%arg0: i32) -> (i32, i32) {
    %c0_i32 = arith.constant 0 : i32
    %c0_i32_0 = arith.constant 0 : i32
    %c0_i32_1 = arith.constant 0 : i32
    return %c0_i32, %c0_i32_0 : i32, i32
  }
  func.func @transform_5(%arg0: i32) -> (i32, i32) {
    %c0_i32 = arith.constant 0 : i32
    %c0_i32_0 = arith.constant 0 : i32
    %c0_i32_1 = arith.constant 0 : i32
    return %c0_i32, %c0_i32_0 : i32, i32
  }
  func.func @transform_6(%arg0: i32) -> (i32, i32) {
    %c0_i32 = arith.constant 0 : i32
    %c0_i32_0 = arith.constant 0 : i32
    %c0_i32_1 = arith.constant 0 : i32
    return %c0_i32, %c0_i32_0 : i32, i32
  }
  func.func @transform_7(%arg0: i32) -> (i32, i32) {
    %c0_i32 = arith.constant 0 : i32
    %c0_i32_0 = arith.constant 0 : i32
    %c0_i32_1 = arith.constant 0 : i32
    return %c0_i32, %c0_i32_0 : i32, i32
  }
  func.func @transform_8(%arg0: i32) -> (i32, i32) {
    %c0_i32 = arith.constant 0 : i32
    %c0_i32_0 = arith.constant 0 : i32
    %c0_i32_1 = arith.constant 0 : i32
    return %c0_i32, %c0_i32_0 : i32, i32
  }
  func.func @transform_9(%arg0: i32) -> (i32, i32) {
    %c0_i32 = arith.constant 0 : i32
    %c0_i32_0 = arith.constant 0 : i32
    %c0_i32_1 = arith.constant 0 : i32
    return %c0_i32, %c0_i32_0 : i32, i32
  }
  func.func @transform_10(%arg0: i32) -> (i32, i32) {
    %c0_i32 = arith.constant 0 : i32
    %c0_i32_0 = arith.constant 0 : i32
    %c0_i32_1 = arith.constant 0 : i32
    return %c0_i32, %c0_i32_0 : i32, i32
  }
  func.func @transform_11(%arg0: i32) -> (i32, i32) {
    %c0_i32 = arith.constant 0 : i32
    %c0_i32_0 = arith.constant 0 : i32
    %c0_i32_1 = arith.constant 0 : i32
    return %c0_i32, %c0_i32_0 : i32, i32
  }
  func.func @transform_12(%arg0: i32) -> (i32, i32) {
    %c0_i32 = arith.constant 0 : i32
    %c0_i32_0 = arith.constant 0 : i32
    %c0_i32_1 = arith.constant 0 : i32
    return %c0_i32, %c0_i32_0 : i32, i32
  }
  func.func @transform_13(%arg0: i32) -> (i32, i32) {
    %c0_i32 = arith.constant 0 : i32
    %c0_i32_0 = arith.constant 0 : i32
    %c0_i32_1 = arith.constant 0 : i32
    return %c0_i32, %c0_i32_0 : i32, i32
  }
  func.func @transform_14(%arg0: i32) -> (i32, i32) {
    %c0_i32 = arith.constant 0 : i32
    %c0_i32_0 = arith.constant 0 : i32
    %c0_i32_1 = arith.constant 0 : i32
    return %c0_i32, %c0_i32_0 : i32, i32
  }
  func.func @transform_15(%arg0: i32) -> (i32, i32) {
    %c0_i32 = arith.constant 0 : i32
    %c0_i32_0 = arith.constant 0 : i32
    return %arg0, %c0_i32 : i32, i32
  }
  func.func @transform_16(%arg0: i32) -> (i32, i32) {
    %c0_i32 = arith.constant 0 : i32
    %c0_i32_0 = arith.constant 0 : i32
    return %arg0, %c0_i32 : i32, i32
  }
}

</mosaic_0001>

<bundles_post_ra>
// kernel: tpu_custom_call.1
= control target key start
LH: loop header
LB: loop body
LE: loop exit
PB: predicated region body
PF: predicated region fallthrough
CT: control target
= control target key end

     0   :  { %s4271_s0 = inlined_call_operand.hbm [shape: bf16[256,128], index: 0, kind: input, shape index: {}]   ;;  %s4272_s1 = inlined_call_operand.hbm [shape: bf16[256,128], index: 1, kind: input, shape index: {}]   ;;  %s4273_s2 = inlined_call_operand.hbm [shape: f32[256,128], index: 2, kind: input, shape index: {}]   ;;  %s4274_s3 = inlined_call_operand.hbm [shape: bf16[128,128], index: 3, kind: input, shape index: {}]   ;;  %s4275_s4 = inlined_call_operand.hbm [shape: bf16[128,128], index: 4, kind: input, shape index: {}]   ;;  %s4276_s5 = inlined_call_operand.vmem [shape: f32[1,128], index: 5, kind: input, shape index: {}]   ;;  %s4277_s6 = inlined_call_operand.hbm [shape: bf16[128,128], index: 6, kind: input, shape index: {}]   ;;  %s4278_s7 = inlined_call_operand.vmem [shape: f32[1,128], index: 7, kind: input, shape index: {}]   ;;  %s4279_s8 = inlined_call_operand.hbm [shape: bf16[128,128], index: 8, kind: input, shape index: {}]   ;;  %s4280_s9 = inlined_call_operand.vmem [shape: f32[1,128], index: 9, kind: input, shape index: {}]   ;;  %s4281_s10 = inlined_call_operand.hbm [shape: bf16[128,128], index: 10, kind: input, shape index: {}]   ;;  %s4282_s11 = inlined_call_operand.hbm [shape: bf16[128,128], index: 11, kind: input, shape index: {}]   ;;  %s4283_s12 = inlined_call_operand.vmem [shape: f32[1,128], index: 12, kind: input, shape index: {}]   ;;  %s4284_s13 = inlined_call_operand.hbm [shape: bf16[128,128], index: 13, kind: input, shape index: {}]   ;;  %s4285_s14 = inlined_call_operand.vmem [shape: f32[1,128], index: 14, kind: input, shape index: {}]   ;;  %s4286_s15 = inlined_call_operand.hbm [shape: f32[256,128], index: 15, kind: output, shape index: {0}]   ;;  %s4287_s16 = inlined_call_operand.hbm [shape: f32[256,256], index: 16, kind: output, shape index: {1}]  }
   0x1   :  { %4305 = sst [smem:[#allocation36_spill]] %s4271_s0 }
   0x2   :  { %4306 = sst [smem:[#allocation37_spill]] %s4272_s1 }
   0x3   :  { %4307 = sst [smem:[#allocation38_spill]] %s4274_s3 }
   0x4   :  { %4308 = sst [smem:[#allocation39_spill]] %s4275_s4 }
   0x5   :  { %4309 = sst [smem:[#allocation40_spill]] %s4277_s6 }
   0x6   :  { %4310 = sst [smem:[#allocation41_spill]] %s4280_s9 }
   0x7   :  { %4311 = sst [smem:[#allocation42_spill]] %s4281_s10 }
   0x8   :  { %4312 = sst [smem:[#allocation43_spill]] %s4283_s12 }
   0x9   :  { %4313 = sst [smem:[#allocation44_spill]] %s4285_s14 }
   0xa   :  { %4314 = sst [smem:[#allocation45_spill]] %s4286_s15 }
   0xb   :  { %4315 = sst [smem:[#allocation46_spill]] %s4287_s16 }
   0xc   :  { %22 = vsyncpa [#allocation3], 0 }
   0xd   :  { %24 = vsyncpa [#allocation3 + $0x1], 0 }
   0xe   :  { %25 = vsyncpa [#allocation6], 0 }
   0xf   :  { %27 = vsyncpa [#allocation6 + $0x1], 0 }
  0x10   :  { %28 = vsyncpa [#allocation9], 0 }
  0x11   :  { %29 = vsyncpa [#allocation12], 0 }
  0x12   :  { %30 = vsyncpa [#allocation15], 0 }
  0x13   :  { %31 = vsyncpa [#allocation18], 0 }
  0x14   :  { %32 = vsyncpa [#allocation4], 0 }
  0x15   :  { %34 = vsyncpa [#allocation4 + $0x1], 0 }
  0x16   :  { %35 = vsyncpa [#allocation21], 0 }
  0x17   :  { %37 = vsyncpa [#allocation21 + $0x1], 0  ;;  %s3693_s21 = smov 0   ;;  %s3695_s22 = smov 0  }
  0x18   :  { %s3697_s23 = smov 0   ;;  %s3699_s24 = smov 0  }
  0x19 LB: > { %4316 = sst [smem:[#allocation30_spill]] %s3579_s21  ;;  %s3717_s28 = sadd.s32 4294967295, %s3591_s24   ;;  %s3591_s24 = sphi %s3699_s24, %s4355_s24   ;;  %s3587_s23 = sphi %s3697_s23, %s4357_s23   ;;  %s3583_s22 = sphi %s3695_s22, %s4359_s22   ;;  %s3579_s21 = sphi %s3693_s21, %s4358_s21  }
  0x1a   : > { %4317 = sst [smem:[#allocation31_spill]] %s3587_s23  ;;  %p2486_p0 = scmp.ge.s32.totalorder %s3591_s24, 1 }
  0x1b   : > { %s4318_s3 = sld [smem:[#allocation38_spill]]  ;;  %p4303_p1 = scmp.eq.s32.totalorder %s3717_s28, 0 }
  0x1c   : > { %p430_p2 = scmp.lt.s32.totalorder %s3591_s24, 3  ;;  %s3593_s30 = smov [#allocation8]  }
  0x1d   : > { %s443_s0 = sshll.u32 %s3593_s30, 4  ;;  %s4320_s6 = sld [smem:[#allocation40_spill]]  ;;  %s444_s0 = int_to_ptr.vmem [resolvable:$true] %s443_s0 }
  0x1e   : > { %p3722_p3 = pnand %p2486_p0, %p430_p2  ;;  %s4322_s10 = sld [smem:[#allocation42_spill]] }
  0x1f   : > { %s4289_s18 = smov 64   ;;  %s50_s26 = sadd.s32 1, %s3587_s23 }
  0x20   : > { %p2970_p4 = pneg %p3722_p3  ;;  %p57_p7 = scmp.ne.s32.totalorder %s3587_s23, %s3583_s22 }
  0x21   : > { %s441_s27 = sshll.u32 %s4318_s3, 4  ;;  %s3594_s3 = smov [#allocation11]   ;;  %s442_s27 = int_to_ptr.hbm [resolvable:$true] %s441_s27 }
  0x22   : > { %p3734_p6 = pnand %p2970_p4, %p4303_p1  ;;  %s474_s17 = sshll.u32 %s3594_s3, 4  ;;  %s475_s17 = int_to_ptr.vmem [resolvable:$true] %s474_s17 }
  0x23   : > { %s472_s19 = sshll.u32 %s4320_s6, 4  ;;  %s4291_s6 = smov 4   ;;  %s473_s19 = int_to_ptr.hbm [resolvable:$true] %s472_s19 }
  0x24   : > { %s506_s30 = sshll.u32 %s4322_s10, 4  ;;  %s3597_s3 = smov [#allocation14]   ;;  %s507_s30 = int_to_ptr.hbm [resolvable:$true] %s506_s30 }
  0x25   : > { %2973 = dma.hbm_to_vmem [thread:$0]  (!%p3734_p6), %s442_s27, 1024, %s444_s0, [#allocation9], %s4289_s18, %s4289_s18, %s4291_s6  }
  0x26   : > { %2979 = dma.hbm_to_vmem [thread:$0]  (!%p3734_p6), %s473_s19, 1024, %s475_s17, [#allocation12], %s4289_s18, %s4289_s18, %s4291_s6  }
  0x27   : > { %s508_s25 = sshll.u32 %s3597_s3, 4  ;;  %s2485_s27 = sadd.s32 4294967294, %s3591_s24   ;;  %s509_s25 = int_to_ptr.vmem [resolvable:$true] %s508_s25 }
  0x28   : > { %2985 = dma.hbm_to_vmem [thread:$0]  (!%p3734_p6), %s507_s30, 1024, %s509_s25, [#allocation15], %s4289_s18, %s4289_s18, %s4291_s6  }
  0x29   : > { %s3758_s0 = sadd.s32 1, %s3591_s24   ;;  %p58_p9 = scmp.eq.s32.totalorder %s3591_s24, 0 }
  0x2a   : > { %4323 = sst [smem:[#allocation32_spill]] %s3758_s0  ;;  %s47_s10 = ssub.s32 %s3591_s24, %s3758_s0 }
  0x2b   : > { %p48_p8 = scmp.eq.s32.totalorder %s47_s10, 0  ;;  %p63_p10 = scmp.ne.s32.totalorder %s3583_s22, %s3579_s21 }
  0x2c   : > { %p391_p11 = scmp.eq.s32.totalorder %s3717_s28, 1  ;;  %p59_p12 = por %p58_p9, %p57_p7 }
  0x2d   : > { %s3770_s19 = scalar_select %p48_p8, %s3587_s23, %s50_s26  }
  0x2e   : > { %p3774_p13 = por %p4303_p1, %p63_p10  ;;  %p3778_p0 = por %p391_p11, %p57_p7 }
  0x2f   : > { %4324 = sst [smem:[#allocation33_spill]] %s3770_s19  ;;  %p397_p2 = scmp.eq.s32.totalorder %s2485_s27, 1 }
  0x30   : > { %s4326_s17 = scalar_select %p3778_p0, 1, 0 }
  0x31   : > { %p3016_p4 = scmp.lt.s32.totalorder %s3591_s24, 2  ;;  %s3784_s3 = sand.u32 1, %s3587_s23  }
  0x32   : > { %4327 = sst [smem:[#allocation34_spill]] %s4326_s17  ;;  %p3786_p5 = por %p397_p2, %p63_p10 }
  0x33   : > { %s4302_s25 = sshll.u32 %s3784_s3, 6  ;;  %s4304_s26 = sshll.u32 %s3591_s24, 6 }
  0x34   : > { %s4328_s10 = scalar_select %p3786_p5, 1, 0 }
  0x35   : > { %p3792_p8 = pnand %p3016_p4, %p59_p12  ;;  %s578_s6 = sand.u32 1, %s3591_s24  }
  0x36   : > { %4329 = sst [smem:[#allocation35_spill]] %s4328_s10  ;;  %s582_s0 = scalar_lea.vmem [#allocation5], %s4302_s25 }
  0x37   : > { %s4331_s1 = sld [smem:[#allocation37_spill]]  ;;  %s590_s21 = sshll.u32 %s582_s0, 4  ;;  %s591_s21 = int_to_ptr.vmem [resolvable:$true] %s590_s21 }
  0x38   : > { %s4332_s4 = sld [smem:[#allocation39_spill]]  ;;  %s3807_s14 = scalar_lea.sflag [#allocation6], %s578_s6 }
  0x39   : > { %p3267_p9 = pneg %p3792_p8 }
  0x3d   : > { %s587_s23 = scalar_lea.hbm %s4331_s1, %s4304_s26  ;;  %s3270_s19 = scalar_lea.hbm %s4331_s1, 128 }
  0x3e   : > { %s588_s15 = sshll.u32 %s587_s23, 4  ;;  %s455_s16 = sshll.u32 %s4332_s4, 4  ;;  %s589_s15 = int_to_ptr.hbm [resolvable:$true] %s588_s15  ;;  %s456_s16 = int_to_ptr.hbm [resolvable:$true] %s455_s16 }
  0x3f   : > { %s3263_s12 = sshra.s32 %s589_s15, 4  ;;  %s3264_s12 = int_to_ptr.hbm [resolvable:$true] %s3263_s12 }
  0x40   : > { %s3265_s9 = scalar_lea.hbm %s3264_s12, 64  ;;  %p3271_p12 = scmp.lt.s32.totalorder %s3264_s12, %s4331_s1 }
  0x41   : > { %p3266_p7 = scmp.ne.s32.totalorder %s3264_s12, %s3265_s9  ;;  %p3272_p2 = scmp.lt.s32.totalorder %s3270_s19, %s3265_s9 }
  0x43   : > { %p3268_p10 = pnand %p3267_p9, %p3266_p7  ;;  %p3273_p4 = por %p3272_p2, %p3271_p12 }
  0x45   : > { %p3269_p11 = pneg %p3268_p10 }
  0x47   : > { %p3274_p1 = pnand %p3273_p4, %p3269_p11 }
  0x49   : > { %3277 = shalt.err (!%p3274_p1)
}
  0x4a   : > { %s4333_s6 = smov 4   ;;  %s4334_s17 = smov 64  }
  0x4b   : > { %2998 = dma.hbm_to_vmem [thread:$0]  (!%p3792_p8), %s589_s15, 1024, %s591_s21, %s3807_s14, %s4334_s17, %s4334_s17, %s4333_s6  }
  0x4c   : > { %s3598_s10 = smov [#allocation10]   ;;  %s489_s9 = sshll.u32 %s4279_s8, 4  ;;  %s490_s9 = int_to_ptr.hbm [resolvable:$true] %s489_s9 }
  0x4d   : > { %s457_s0 = sshll.u32 %s3598_s10, 4  ;;  %s520_s15 = sshll.u32 %s4282_s11, 4  ;;  %s458_s0 = int_to_ptr.vmem [resolvable:$true] %s457_s0  ;;  %s521_s15 = int_to_ptr.hbm [resolvable:$true] %s520_s15 }
  0x4e   : > { %2976 = dma.hbm_to_vmem [thread:$0]  (!%p3734_p6), %s456_s16, 1024, %s458_s0, [#allocation9], %s4334_s17, %s4334_s17, %s4333_s6  }
  0x4f   : > { %s3599_s21 = smov [#allocation13]   ;;  %s3600_s26 = smov [#allocation16]  }
  0x50   : > { %s491_s19 = sshll.u32 %s3599_s21, 4  ;;  %s522_s27 = sshll.u32 %s3600_s26, 4  ;;  %s492_s19 = int_to_ptr.vmem [resolvable:$true] %s491_s19  ;;  %s523_s27 = int_to_ptr.vmem [resolvable:$true] %s522_s27 }
  0x51   : > { %2982 = dma.hbm_to_vmem [thread:$0]  (!%p3734_p6), %s490_s9, 1024, %s492_s19, [#allocation12], %s4334_s17, %s4334_s17, %s4333_s6  }
  0x52   : > { %s537_s0 = sshll.u32 %s4284_s13, 4  ;;  %s3601_s23 = smov [#allocation17]   ;;  %s538_s0 = int_to_ptr.hbm [resolvable:$true] %s537_s0 }
  0x53   : > { %2988 = dma.hbm_to_vmem [thread:$0]  (!%p3734_p6), %s521_s15, 1024, %s523_s27, [#allocation15], %s4334_s17, %s4334_s17, %s4333_s6  }
  0x54   : > { %s539_s12 = sshll.u32 %s3601_s23, 4  ;;  %s4335_s25 = sshll.u32 %s3591_s24, 6  ;;  %s540_s12 = int_to_ptr.vmem [resolvable:$true] %s539_s12 }
  0x55   : > { %s4336_s19 = sld [smem:[#allocation36_spill]]  ;;  %s4337_s10 = sshll.u32 %s3784_s3, 6 }
  0x56   : > { %2991 = dma.hbm_to_vmem [thread:$0]  (!%p3734_p6), %s538_s0, 1024, %s540_s12, [#allocation18], %s4334_s17, %s4334_s17, %s4333_s6  }
  0x57   : > { %s560_s1 = scalar_lea.vmem [#allocation2], %s4337_s10  ;;  %s557_s15 = scalar_lea.sflag [#allocation3], %s3784_s3 }
  0x58   : > { %s568_s4 = sshll.u32 %s560_s1, 4  ;;  %s569_s4 = int_to_ptr.vmem [resolvable:$true] %s568_s4 }
  0x5b   : > { %s565_s26 = scalar_lea.hbm %s4336_s19, %s4335_s25  ;;  %s3420_s9 = scalar_lea.hbm %s4336_s19, 128 }
  0x5c   : > { %s566_s16 = sshll.u32 %s565_s26, 4  ;;  %s567_s16 = int_to_ptr.hbm [resolvable:$true] %s566_s16 }
  0x5d   : > { %s3413_s27 = sshra.s32 %s567_s16, 4  ;;  %s3414_s27 = int_to_ptr.hbm [resolvable:$true] %s3413_s27 }
  0x5e   : > { %s3415_s23 = scalar_lea.hbm %s3414_s27, 64  ;;  %p3421_p6 = scmp.lt.s32.totalorder %s3414_s27, %s4336_s19 }
  0x5f   : > { %p3416_p1 = scmp.ne.s32.totalorder %s3414_s27, %s3415_s23  ;;  %p3422_p11 = scmp.lt.s32.totalorder %s3420_s9, %s3415_s23 }
  0x61   : > { %p3418_p7 = pnand %p3416_p1, %p3267_p9  ;;  %p3423_p12 = por %p3422_p11, %p3421_p6 }
  0x63   : > { %p3419_p10 = pneg %p3418_p7 }
  0x65   : > { %p3424_p2 = pnand %p3423_p12, %p3419_p10 }
  0x67   : > { %3427 = shalt.err (!%p3424_p2)
}
  0x68   : > { %2995 = dma.hbm_to_vmem [thread:$0]  (!%p3792_p8), %s567_s16, 1024, %s569_s4, %s557_s15, %s4334_s17, %s4334_s17, %s4333_s6  }
  0x69   : > { %s2501_s1 = sshll.u32 %s3784_s3, 7  ;;  %s2832_s21 = sshll.u32 %s3591_s24, 7 }
  0x6a   : > { %s609_s20 = scalar_lea.hbm %s4273_s2, %s2832_s21  ;;  %s604_s23 = scalar_lea.vmem [#allocation7], %s2501_s1 }
  0x6b   : > { %s610_s27 = sshll.u32 %s609_s20, 4  ;;  %s612_s25 = sshll.u32 %s604_s23, 4  ;;  %s611_s27 = int_to_ptr.hbm [resolvable:$true] %s610_s27  ;;  %s613_s25 = int_to_ptr.vmem [resolvable:$true] %s612_s25 }
  0x6c   : > { %s3443_s9 = sshra.s32 %s611_s27, 4  ;;  %s3450_s6 = scalar_lea.hbm %s4273_s2, 256  ;;  %s3444_s9 = int_to_ptr.hbm [resolvable:$true] %s3443_s9 }
  0x6d   : > { %s3445_s0 = scalar_lea.hbm %s3444_s9, 128  ;;  %p3451_p10 = scmp.lt.s32.totalorder %s3444_s9, %s4273_s2 }
  0x6e   : > { %p3446_p4 = scmp.ne.s32.totalorder %s3444_s9, %s3445_s0  ;;  %p3452_p6 = scmp.lt.s32.totalorder %s3450_s6, %s3445_s0 }
  0x70   : > { %p3448_p1 = pnand %p3446_p4, %p3267_p9  ;;  %p3453_p11 = por %p3452_p6, %p3451_p10 }
  0x72   : > { %p3449_p7 = pneg %p3448_p1 }
  0x74   : > { %p3454_p12 = pnand %p3453_p11, %p3449_p7 }
  0x76   : > { %3457 = shalt.err (!%p3454_p12)
}
  0x77   : > { %s3602_s15 = smov 128   ;;  %s3603_s12 = smov 8  }
  0x78   : > { %3001 = dma.hbm_to_vmem [thread:$0]  (!%p3792_p8), %s611_s27, 2048, %s613_s25, %s3807_s14, %s3602_s15, %s3602_s15, %s3603_s12  }
  0x79   : > { %624 = sbr.rel (%p3722_p3) target bundleno = 936 (0x3a8), region = 80  ;;  %s3897_s1 = sand.u32 (!%p3722_p3), 1, %s3583_s22  }
  0x7a   : > { %s2505_s21 = sshll.u32 (!%p3722_p3), %s3897_s1, 6  ;;  %s627_s26 = scalar_lea.sflag (!%p3722_p3), [#allocation3], %s3897_s1 }
  0x7b   : > { %s3901_s10 = scalar_lea.vmem (!%p3722_p3), [#allocation2], %s2505_s21 }
  0x7e   : > { %3546 = dma.done.wait (%p3774_p13), %s627_s26, 1024  }
  0x7f   : > { %3548 = vsyncadd (%p3774_p13), %s627_s26, 4294966272  ;;  %s636_s14 = sand.u32 1, %s3717_s28   ;;  %s3908_s18 = scalar_lea.vmem [#allocation5], %s2505_s21 }
  0x80   : > { %s637_s29 = scalar_lea.sflag [#allocation6], %s636_s14 }
  0x81   : > { %3550 = dma.done.wait (%p3774_p13), %s637_s29, 3072  }
  0x82   : > { %3552 = vsyncadd (%p3774_p13), %s637_s29, 4294964224  ;;  %s2507_s20 = sshll.u32 %s3897_s1, 7  ;;  %p4338_p3 = scmp.eq.s32.totalorder %s3717_s28, 0 }
  0x83   : > { %s3917_s27 = scalar_lea.vmem [#allocation7], %s2507_s20 }
  0x84   : > { %3554 = dma.done.wait (%p4338_p3), [#allocation9], 2048   ;;  %p4339_p8 = pmov %p4338_p3 }
  0x85   : > { %p4340_p9 = pmov %p4338_p3 }
  0x86   : > { %3556 = vsyncadd (%p4339_p8), [#allocation9], 4294965248 }
  0x87   : > { %3558 = dma.done.wait (%p4340_p9), [#allocation12], 2048   ;;  %p4341_p2 = pmov %p4338_p3 }
  0x89   : > { %3560 = vsyncadd (%p4341_p2), [#allocation12], 4294965248  ;;  %p4342_p13 = pmov %p4341_p2 }
  0x8a   : > { %p4343_p4 = pmov %p4341_p2 }
  0x8b   : > { %3562 = dma.done.wait (%p4342_p13), [#allocation15], 2048  }
  0x8c   : > { %3564 = vsyncadd (%p4343_p4), [#allocation15], 4294965248  ;;  %p4344_p1 = pmov %p4341_p2 }
  0x8e   : > { %3566 = dma.done.wait (%p4344_p1), [#allocation18], 1024   ;;  %p4345_p7 = pmov %p4344_p1 }
  0x8f   : > { %v2864_v0 = vld [vmem:[#allocation10 + $0x38] sm:$0xff]  ;;  %v2863_v1 = vld [vmem:[#allocation10 + $0x30] sm:$0xff]  ;;  %v2862_v3 = vld [vmem:[#allocation10 + $0x28] sm:$0xff]  ;;  %s2516_s25 = sshll.u32 %s3897_s1, 8  ;;  %s4346_s17 = sld [smem:[#allocation41_spill]] }
  0x90   : > { %3568 = vsyncadd (%p4345_p7), [#allocation18], 4294966272  ;;  %915 = vmatpush.bf16.msra.mxu0 %v2864_v0  ;;  %2908 = vmatpush.bf16.msra.mxu3 %v2864_v0  ;;  %v2856_v2 = vld [vmem:[#allocation8 + $0x38] sm:$0xff]  ;;  %v2855_v4 = vld [vmem:[#allocation8 + $0x30] sm:$0xff]  ;;  %s4005_s4 = scalar_lea.vmem [#allocation20], %s2516_s25  ;;  %s4347_s12 = sld [smem:[#allocation43_spill]] }
  0x91   : > { %2916 = vmatpush.bf16.msra.mxu1 %v2856_v2  ;;  %v2861_v5 = vld [vmem:[#allocation10 + $0x20] sm:$0xff]  ;;  %v2854_v6 = vld [vmem:[#allocation8 + $0x28] sm:$0xff]  ;;  %v2860_v7 = vld [vmem:[#allocation10 + $0x18] sm:$0xff]  ;;  %s2907_s14 = sshll.u32 %s3717_s28, 8  ;;  %s2266_s23 = sshll.u32 %s4005_s4, 4  ;;  %s2267_s23 = int_to_ptr.vmem [resolvable:$true] %s2266_s23 }
  0x92   : > { %v2853_v8 = vld [vmem:[#allocation8 + $0x20] sm:$0xff]  ;;  %v2859_v9 = vld [vmem:[#allocation10 + $0x10] sm:$0xff]  ;;  %v2852_v10 = vld [vmem:[#allocation8 + $0x18] sm:$0xff]  ;;  %s2236_s0 = scalar_lea.sflag [#allocation21], %s3897_s1 }
  0x93   : > { %v2858_v11 = vld [vmem:[#allocation10 + $0x8] sm:$0xff]  ;;  %v2851_v12 = vld [vmem:[#allocation8 + $0x10] sm:$0xff]  ;;  %v2857_v13 = vld [vmem:[#allocation10] sm:$0xff] }
  0x94   : > { %916 = vmatpush.bf16.msra.mxu0 %v2863_v1  ;;  %2909 = vmatpush.bf16.msra.mxu3 %v2863_v1  ;;  %v2850_v14 = vld [vmem:[#allocation8 + $0x8] sm:$0xff]  ;;  %v3936_v15 = vld [vmem:[%s3908_s18] sm:$0xff]  ;;  %v3940_v17 = vld [vmem:[%s3908_s18 + $0x10] sm:$0xff] }
  0x95   : > { %2917 = vmatpush.bf16.msra.mxu1 %v2855_v4  ;;  %v2849_v16 = vld [vmem:[#allocation8] sm:$0xff]  ;;  %v3944_v18 = vld [vmem:[%s3908_s18 + $0x8] sm:$0xff]  ;;  %v2835_v19 = vld [vmem:[%s3901_s10 + $0x10] sm:$0xff] }
  0x96   : > { %v3949_v20 = vld [vmem:[%s3908_s18 + $0x18] sm:$0xff]  ;;  %v2879_v22 = vld [vmem:[#allocation13 + $0x30] sm:$0xff]  ;;  %v2833_v23 = vld [vmem:[%s3901_s10] sm:$0xff] }
  0x97   : > { %v2880_v21 = vld [vmem:[#allocation13 + $0x38] sm:$0xff]  ;;  %v3955_v25 = vld [vmem:[%s3908_s18 + $0x20] sm:$0xff]  ;;  %v2878_v26 = vld [vmem:[#allocation13 + $0x28] sm:$0xff] }
  0x98   : > { %917 = vmatpush.bf16.msra.mxu0 %v2862_v3  ;;  %2910 = vmatpush.bf16.msra.mxu3 %v2862_v3  ;;  %v2836_v24 = vld [vmem:[%s3901_s10 + $0x18] sm:$0xff]  ;;  %v2834_v27 = vld [vmem:[%s3901_s10 + $0x8] sm:$0xff]  ;;  %v2837_v28 = vld [vmem:[%s3901_s10 + $0x20] sm:$0xff] }
  0x99   : > { %2918 = vmatpush.bf16.msra.mxu1 %v2854_v6  ;;  %v3961_v29 = vld [vmem:[%s3908_s18 + $0x28] sm:$0xff]  ;;  %v2877_v30 = vld [vmem:[#allocation13 + $0x20] sm:$0xff]  ;;  %v3966_v32 = vld [vmem:[%s3908_s18 + $0x30] sm:$0xff] }
  0x9a   : > { %v2838_v31 = vld [vmem:[%s3901_s10 + $0x28] sm:$0xff]  ;;  %v2839_v33 = vld [vmem:[%s3901_s10 + $0x30] sm:$0xff]  ;;  %v3971_v34 = vld [vmem:[%s3908_s18 + $0x38] sm:$0xff] }
  0x9b   : > { %v2876_v35 = vld [vmem:[#allocation13 + $0x18] sm:$0xff]  ;;  %v2875_v37 = vld [vmem:[#allocation13 + $0x10] sm:$0xff]  ;;  %v2874_v40 = vld [vmem:[#allocation13 + $0x8] sm:$0xff] }
  0x9c   : > { %918 = vmatpush.bf16.msra.mxu0 %v2861_v5  ;;  %2911 = vmatpush.bf16.msra.mxu3 %v2861_v5  ;;  %v2840_v36 = vld [vmem:[%s3901_s10 + $0x38] sm:$0xff]  ;;  %v2871_v39 = vld [vmem:[#allocation11 + $0x30] sm:$0xff]  ;;  %v2870_v41 = vld [vmem:[#allocation11 + $0x28] sm:$0xff]  ;;  %s4348_s10 = sld [smem:[#allocation44_spill]] }
  0x9d   : > { %2919 = vmatpush.bf16.msra.mxu1 %v2853_v8  ;;  %v2872_v38 = vld [vmem:[#allocation11 + $0x38] sm:$0xff]  ;;  %v2869_v42 = vld [vmem:[#allocation11 + $0x20] sm:$0xff]  ;;  %v2867_v45 = vld [vmem:[#allocation11 + $0x10] sm:$0xff] }
  0x9e   : > { %2924 = vmatpush.bf16.msra.mxu2 %v2872_v38  ;;  %v2868_v44 = vld [vmem:[#allocation11 + $0x18] sm:$0xff]  ;;  %v2873_v46 = vld [vmem:[#allocation13] sm:$0xff]  ;;  %v2866_v48 = vld [vmem:[#allocation11 + $0x8] sm:$0xff] }
  0x9f   : > { %v2865_v49 = vld [vmem:[#allocation11] sm:$0xff] }
  0xa0   : > { %919 = vmatpush.bf16.msra.mxu0 %v2860_v7  ;;  %2912 = vmatpush.bf16.msra.mxu3 %v2860_v7  ;;  %v3978_v53 = vld [vmem:[%s4276_s5] ss:$0 sm:$0xff] }
  0xa1   : > { %2920 = vmatpush.bf16.msra.mxu1 %v2852_v10 }
  0xa2   : > { %2925 = vmatpush.bf16.msra.mxu2 %v2871_v39 }
  0xa4   : > { %920 = vmatpush.bf16.msra.mxu0 %v2859_v9  ;;  %2913 = vmatpush.bf16.msra.mxu3 %v2859_v9 }
  0xa5   : > { %2921 = vmatpush.bf16.msra.mxu1 %v2851_v12 }
  0xa6   : > { %2926 = vmatpush.bf16.msra.mxu2 %v2870_v41 }
  0xa8   : > { %921 = vmatpush.bf16.msra.mxu0 %v2858_v11  ;;  %2914 = vmatpush.bf16.msra.mxu3 %v2858_v11 }
  0xa9   : > { %2922 = vmatpush.bf16.msra.mxu1 %v2850_v14 }
  0xaa   : > { %2927 = vmatpush.bf16.msra.mxu2 %v2869_v42 }
  0xac   : > { %922 = vmatpush.bf16.msra.mxu0 %v2857_v13  ;;  %2915 = vmatpush.bf16.msra.mxu3 %v2857_v13 }
  0xad   : > { %2923 = vmatpush.bf16.msra.mxu1 %v2849_v16 }
  0xae   : > { %2928 = vmatpush.bf16.msra.mxu2 %v2868_v44 }
  0xaf   : > { %923 = vmatmul.bf16.vlgmr.msra.gmra.mxu0 %v3936_v15  ;;  %933 = vmatmul.bf16.vlgmr.msra.gmra.mxu3 %v3940_v17 }
  0xb0   : > { %1060 = vmatpush.bf16.msrb.mxu0 %v2856_v2  ;;  %1078 = vmatmul.bf16.vlgmr.msra.gmra.mxu1 %v2835_v19 }
  0xb1   : > { %1338 = vmatpush.bf16.msrb.mxu3 %v2880_v21 }
  0xb2   : > { %2929 = vmatpush.bf16.msra.mxu2 %v2867_v45 }
  0xb4   : > { %1061 = vmatpush.bf16.msrb.mxu0 %v2855_v4 }
  0xb5   : > { %1339 = vmatpush.bf16.msrb.mxu3 %v2879_v22 }
  0xb6   : > { %2930 = vmatpush.bf16.msra.mxu2 %v2866_v48 }
  0xb8   : > { %1062 = vmatpush.bf16.msrb.mxu0 %v2854_v6 }
  0xb9   : > { %1340 = vmatpush.bf16.msrb.mxu3 %v2878_v26 }
  0xba   : > { %2931 = vmatpush.bf16.msra.mxu2 %v2865_v49 }
  0xbc   : > { %1063 = vmatpush.bf16.msrb.mxu0 %v2853_v8 }
  0xbd   : > { %1341 = vmatpush.bf16.msrb.mxu3 %v2877_v30 }
  0xbf   : > { %928 = vmatmul.bf16.gmra.mxu0 %v3944_v18  ;;  %938 = vmatmul.bf16.gmra.mxu3 %v3949_v20 }
  0xc0   : > { %1064 = vmatpush.bf16.msrb.mxu0 %v2852_v10  ;;  %1083 = vmatmul.bf16.gmra.mxu1 %v2836_v24 }
  0xc1   : > { %1342 = vmatpush.bf16.msrb.mxu3 %v2876_v35 }
  0xc4   : > { %1065 = vmatpush.bf16.msrb.mxu0 %v2851_v12 }
  0xc5   : > { %1343 = vmatpush.bf16.msrb.mxu3 %v2875_v37 }
  0xc8   : > { %1066 = vmatpush.bf16.msrb.mxu0 %v2850_v14 }
  0xc9   : > { %1344 = vmatpush.bf16.msrb.mxu3 %v2874_v40 }
  0xcc   : > { %1067 = vmatpush.bf16.msrb.mxu0 %v2849_v16 }
  0xcd   : > { %1345 = vmatpush.bf16.msrb.mxu3 %v2873_v46 }
  0xcf   : > { %1068 = vmatmul.bf16.vlgmr.msrb.gmra.mxu0 %v2833_v23  ;;  %943 = vmatmul.bf16.gmra.mxu3 %v3955_v25 }
  0xd0   : > { %1088 = vmatmul.bf16.gmra.mxu1 %v2837_v28  ;;  %1221 = vmatpush.bf16.msra.mxu0 %v2872_v38 }
  0xd4   : > { %1222 = vmatpush.bf16.msra.mxu0 %v2871_v39 }
  0xd8   : > { %1223 = vmatpush.bf16.msra.mxu0 %v2870_v41 }
  0xdc   : > { %1224 = vmatpush.bf16.msra.mxu0 %v2869_v42 }
  0xdf   : > { %1073 = vmatmul.bf16.gmra.mxu0 %v2834_v27  ;;  %948 = vmatmul.bf16.gmra.mxu3 %v3961_v29 }
  0xe0   : > { %1093 = vmatmul.bf16.gmra.mxu1 %v2838_v31  ;;  %1225 = vmatpush.bf16.msra.mxu0 %v2868_v44 }
  0xe4   : > { %1226 = vmatpush.bf16.msra.mxu0 %v2867_v45 }
  0xe8   : > { %1227 = vmatpush.bf16.msra.mxu0 %v2866_v48 }
  0xec   : > { %1228 = vmatpush.bf16.msra.mxu0 %v2865_v49 }
  0xef   : > { %953 = vmatmul.bf16.gmra.mxu3 %v3966_v32 }
  0xf0   : > { %1098 = vmatmul.bf16.gmra.mxu1 %v2839_v33 }
  0xff   : > { %958 = vmatmul.bf16.gmra.mxu3 %v3971_v34 }
 0x100   : > { %1103 = vmatmul.bf16.gmra.mxu1 %v2840_v36 }
 0x12c   : > { %v924_v43 = vpop.f32.mrf.mxu0 }
 0x12d   : > { %v1079_v52 = vpop.f32.mrf.mxu1 }
 0x132   : > { %v934_v50 = vpop.f32.mrf.mxu3 }
 0x133   : > { %v1080_v54 = vadd.f32 %v1079_v52, %v934_v50  ;;  %v2888_v50 = vld [vmem:[#allocation14 + $0x38] sm:$0xff] }
 0x134   : > { %v926_v47 = vpop.f32.mrf.mxu0  ;;  %1668 = vmatpush.bf16.msrb.mxu1 %v2888_v50 }
 0x135   : > { %v1117_v55 = vadd.f32 %v3978_v53, %v1080_v54  ;;  %v1081_v58 = vpop.f32.mrf.mxu1 }
 0x137   : > { %v1133_v60 = vmax.f32 %v1117_v55, 0.0 }
 0x13a   : > { %v936_v56 = vpop.f32.mrf.mxu3 }
 0x13b   : > { %v1082_v59 = vadd.f32 %v1081_v58, %v936_v56 }
 0x13c   : > { %v929_v51 = vpop.f32.mrf.mxu0 }
 0x13d   : > { %v1118_v61 = vadd.f32 %v3978_v53, %v1082_v59  ;;  %v1084_v2 = vpop.f32.mrf.mxu1 }
 0x13f   : > { %v1134_v62 = vmax.f32 %v1118_v61, 0.0 }
 0x141   : > { %v1147_v0 = vpack.c.bf16 %v1134_v62, %v1133_v60 }
 0x142   : > { %v939_v63 = vpop.f32.mrf.mxu3 }
 0x143   : > { %1239 = vmatmul.bf16.vlgmr.msra.gmra.mxu2 %v1147_v0  ;;  %v1085_v3 = vadd.f32 %v1084_v2, %v939_v63  ;;  %v2887_v63 = vld [vmem:[#allocation14 + $0x30] sm:$0xff] }
 0x144   : > { %v931_v57 = vpop.f32.mrf.mxu0  ;;  %1669 = vmatpush.bf16.msrb.mxu1 %v2887_v63 }
 0x145   : > { %v1119_v5 = vadd.f32 %v3978_v53, %v1085_v3  ;;  %v1086_v8 = vpop.f32.mrf.mxu1 }
 0x147   : > { %v1135_v13 = vmax.f32 %v1119_v5, 0.0 }
 0x14a   : > { %v941_v6 = vpop.f32.mrf.mxu3 }
 0x14b   : > { %v1087_v11 = vadd.f32 %v1086_v8, %v941_v6 }
 0x14c   : > { %v1069_v1 = vpop.f32.mrf.mxu0 }
 0x14d   : > { %v1070_v4 = vadd.f32 %v1069_v1, %v924_v43  ;;  %v1120_v14 = vadd.f32 %v3978_v53, %v1087_v11  ;;  %v1089_v27 = vpop.f32.mrf.mxu1 }
 0x14f   : > { %v1113_v9 = vadd.f32 %v3978_v53, %v1070_v4  ;;  %v1136_v21 = vmax.f32 %v1120_v14, 0.0 }
 0x151   : > { %v1129_v16 = vmax.f32 %v1113_v9, 0.0  ;;  %v1148_v24 = vpack.c.bf16 %v1136_v21, %v1135_v13 }
 0x152   : > { %v944_v23 = vpop.f32.mrf.mxu3 }
 0x153   : > { %1244 = vmatmul.bf16.gmra.mxu2 %v1148_v24  ;;  %v1090_v28 = vadd.f32 %v1089_v27, %v944_v23  ;;  %v2885_v27 = vld [vmem:[#allocation14 + $0x20] sm:$0xff] }
 0x154   : > { %v1071_v7 = vpop.f32.mrf.mxu0 }
 0x155   : > { %v1072_v10 = vadd.f32 %v1071_v7, %v926_v47  ;;  %v1121_v31 = vadd.f32 %v3978_v53, %v1090_v28  ;;  %v1091_v36 = vpop.f32.mrf.mxu1  ;;  %v2884_v28 = vld [vmem:[#allocation14 + $0x18] sm:$0xff] }
 0x157   : > { %v1114_v12 = vadd.f32 %v3978_v53, %v1072_v10  ;;  %v1137_v41 = vmax.f32 %v1121_v31, 0.0  ;;  %v2895_v31 = vld [vmem:[#allocation16 + $0x30] sm:$0xff] }
 0x159   : > { %v1130_v19 = vmax.f32 %v1114_v12, 0.0  ;;  %v2886_v12 = vld [vmem:[#allocation14 + $0x28] sm:$0xff] }
 0x15a   : > { %v946_v33 = vpop.f32.mrf.mxu3  ;;  %1670 = vmatpush.bf16.msrb.mxu1 %v2886_v12 }
 0x15b   : > { %v1145_v22 = vpack.c.bf16 %v1130_v19, %v1129_v16  ;;  %v1092_v39 = vadd.f32 %v1091_v36, %v946_v33  ;;  %v2894_v33 = vld [vmem:[#allocation16 + $0x28] sm:$0xff] }
 0x15c   : > { %v1074_v26 = vpop.f32.mrf.mxu0  ;;  %v2882_v36 = vld [vmem:[#allocation14 + $0x8] sm:$0xff] }
 0x15d   : > { %1229 = vmatmul.bf16.vlgmr.msra.gmra.mxu0 %v1145_v22  ;;  %1346 = vmatmul.bf16.vlgmr.msrb.gmra.mxu3 %v1145_v22  ;;  %v1075_v30 = vadd.f32 %v1074_v26, %v929_v51  ;;  %v1122_v42 = vadd.f32 %v3978_v53, %v1092_v39  ;;  %v1094_v49 = vpop.f32.mrf.mxu1  ;;  %v4000_v39 = vld [vmem:[%s4278_s7] ss:$0 sm:$0xff] }
 0x15e   : > { %1671 = vmatpush.bf16.msrb.mxu1 %v2885_v27 }
 0x15f   : > { %v1115_v37 = vadd.f32 %v3978_v53, %v1075_v30  ;;  %v1138_v45 = vmax.f32 %v1122_v42, 0.0  ;;  %v2883_v30 = vld [vmem:[#allocation14 + $0x10] sm:$0xff] }
 0x161   : > { %v1131_v43 = vmax.f32 %v1115_v37, 0.0  ;;  %v1149_v48 = vpack.c.bf16 %v1138_v45, %v1137_v41  ;;  %v2891_v37 = vld [vmem:[#allocation16 + $0x10] sm:$0xff] }
 0x162   : > { %v949_v47 = vpop.f32.mrf.mxu3  ;;  %1672 = vmatpush.bf16.msrb.mxu1 %v2884_v28 }
 0x163   : > { %1249 = vmatmul.bf16.gmra.mxu2 %v1149_v48  ;;  %v1095_v51 = vadd.f32 %v1094_v49, %v949_v47 }
 0x164   : > { %v1076_v35 = vpop.f32.mrf.mxu0 }
 0x165   : > { %v1077_v38 = vadd.f32 %v1076_v35, %v931_v57  ;;  %v1123_v52 = vadd.f32 %v3978_v53, %v1095_v51  ;;  %v1096_v55 = vpop.f32.mrf.mxu1  ;;  %v2892_v35 = vld [vmem:[#allocation16 + $0x18] sm:$0xff] }
 0x166   : > { %1673 = vmatpush.bf16.msrb.mxu1 %v2883_v30 }
 0x167   : > { %v1116_v40 = vadd.f32 %v3978_v53, %v1077_v38  ;;  %v1139_v57 = vmax.f32 %v1123_v52, 0.0  ;;  %v2890_v38 = vld [vmem:[#allocation16 + $0x8] sm:$0xff] }
 0x169   : > { %v1132_v44 = vmax.f32 %v1116_v40, 0.0  ;;  %v2889_v40 = vld [vmem:[#allocation16] sm:$0xff] }
 0x16a   : > { %v951_v54 = vpop.f32.mrf.mxu3  ;;  %1674 = vmatpush.bf16.msrb.mxu1 %v2882_v36  ;;  %v1438_v36 = vld [vmem:[%s3917_s27 + $0x18] sm:$0xff] }
 0x16b   : > { %v1146_v46 = vpack.c.bf16 %v1132_v44, %v1131_v43  ;;  %v1097_v56 = vadd.f32 %v1096_v55, %v951_v54  ;;  %v2881_v43 = vld [vmem:[#allocation14] sm:$0xff] }
 0x16d   : > { %1234 = vmatmul.bf16.gmra.mxu0 %v1146_v46  ;;  %1351 = vmatmul.bf16.gmra.mxu3 %v1146_v46  ;;  %v1124_v58 = vadd.f32 %v3978_v53, %v1097_v56  ;;  %v1099_v62 = vpop.f32.mrf.mxu1 }
 0x16e   : > { %1675 = vmatpush.bf16.msrb.mxu1 %v2881_v43 }
 0x16f   : > { %v1140_v59 = vmax.f32 %v1124_v58, 0.0 }
 0x171   : > { %v1150_v61 = vpack.c.bf16 %v1140_v59, %v1139_v57 }
 0x172   : > { %v954_v60 = vpop.f32.mrf.mxu3 }
 0x173   : > { %1254 = vmatmul.bf16.gmra.mxu2 %v1150_v61  ;;  %v1100_v1 = vadd.f32 %v1099_v62, %v954_v60 }
 0x175   : > { %v1125_v2 = vadd.f32 %v3978_v53, %v1100_v1  ;;  %v1101_v4 = vpop.f32.mrf.mxu1 }
 0x177   : > { %v1141_v6 = vmax.f32 %v1125_v2, 0.0 }
 0x17a   : > { %v956_v3 = vpop.f32.mrf.mxu3 }
 0x17b   : > { %v1102_v5 = vadd.f32 %v1101_v4, %v956_v3  ;;  %v1435_v4 = vld [vmem:[%s3917_s27] sm:$0xff] }
 0x17d   : > { %1356 = vmatmul.bf16.gmra.mxu3 %v1147_v0  ;;  %v1126_v7 = vadd.f32 %v3978_v53, %v1102_v5  ;;  %v1104_v11 = vpop.f32.mrf.mxu1 }
 0x17f   : > { %v1142_v8 = vmax.f32 %v1126_v7, 0.0 }
 0x181   : > { %v1151_v10 = vpack.c.bf16 %v1142_v8, %v1141_v6 }
 0x182   : > { %v959_v9 = vpop.f32.mrf.mxu3 }
 0x183   : > { %1259 = vmatmul.bf16.gmra.mxu2 %v1151_v10  ;;  %v1105_v0 = vadd.f32 %v1104_v11, %v959_v9 }
 0x185   : > { %v1127_v13 = vadd.f32 %v3978_v53, %v1105_v0  ;;  %v1106_v16 = vpop.f32.mrf.mxu1 }
 0x187   : > { %v1143_v21 = vmax.f32 %v1127_v13, 0.0 }
 0x18a   : > { %v961_v14 = vpop.f32.mrf.mxu3 }
 0x18b   : > { %v1107_v19 = vadd.f32 %v1106_v16, %v961_v14 }
 0x18d   : > { %1361 = vmatmul.bf16.gmra.mxu3 %v1148_v24  ;;  %v1128_v22 = vadd.f32 %v3978_v53, %v1107_v19  ;;  %v2896_v24 = vld [vmem:[#allocation16 + $0x38] sm:$0xff]  ;;  %v2893_v53 = vld [vmem:[#allocation16 + $0x20] sm:$0xff] }
 0x18e   : > { %1571 = vmatpush.bf16.msrb.mxu0 %v2896_v24 }
 0x18f   : > { %v1144_v23 = vmax.f32 %v1128_v22, 0.0 }
 0x191   : > { %v1152_v26 = vpack.c.bf16 %v1144_v23, %v1143_v21 }
 0x192   : > { %1572 = vmatpush.bf16.msrb.mxu0 %v2895_v31  ;;  %v1437_v31 = vld [vmem:[%s3917_s27 + $0x10] sm:$0xff] }
 0x193   : > { %1264 = vmatmul.bf16.gmra.mxu2 %v1152_v26 }
 0x196   : > { %1573 = vmatpush.bf16.msrb.mxu0 %v2894_v33 }
 0x19a   : > { %1574 = vmatpush.bf16.msrb.mxu0 %v2893_v53 }
 0x19d   : > { %1366 = vmatmul.bf16.gmra.mxu3 %v1149_v48  ;;  %v4020_v48 = vld [vmem:[%s4346_s17] ss:$0 sm:$0xff] }
 0x19e   : > { %1575 = vmatpush.bf16.msrb.mxu0 %v2892_v35 }
 0x1a2   : > { %1576 = vmatpush.bf16.msrb.mxu0 %v2891_v37 }
 0x1a6   : > { %1577 = vmatpush.bf16.msrb.mxu0 %v2890_v38 }
 0x1aa   : > { %1578 = vmatpush.bf16.msrb.mxu0 %v2889_v40 }
 0x1ad   : > { %1371 = vmatmul.bf16.gmra.mxu3 %v1150_v61  ;;  %1579 = vmatmul.bf16.vlgmr.msrb.gmra.mxu0 %v3936_v15 }
 0x1bd   : > { %1376 = vmatmul.bf16.gmra.mxu3 %v1151_v10  ;;  %1584 = vmatmul.bf16.gmra.mxu0 %v3944_v18  ;;  %v1436_v10 = vld [vmem:[%s3917_s27 + $0x8] sm:$0xff] }
 0x1c6   : > { %v1240_v41 = vpop.f32.mrf.mxu2 }
 0x1c7   : > { %v4003_v42 = vadd.f32 %v4000_v39, %v1240_v41 }
 0x1c9   : > { %2202 = vst [vmem:[%s4005_s4 + $0x40] sm:$0xff] %v4003_v42 }
 0x1cd   : > { %1381 = vmatmul.bf16.gmra.mxu3 %v1152_v26  ;;  %1589 = vmatmul.bf16.gmra.mxu0 %v3940_v17 }
 0x1ce   : > { %v1242_v44 = vpop.f32.mrf.mxu2 }
 0x1cf   : > { %v4011_v45 = vadd.f32 %v4000_v39, %v1242_v44 }
 0x1d1   : > { %2203 = vst [vmem:[%s4005_s4 + $0x50] sm:$0xff] %v4011_v45 }
 0x1d6   : > { %v1245_v50 = vpop.f32.mrf.mxu2 }
 0x1d7   : > { %v4024_v52 = vadd.f32 %v4000_v39, %v1245_v50 }
 0x1d9   : > { %2204 = vst [vmem:[%s4005_s4 + $0x60] sm:$0xff] %v4024_v52 }
 0x1da   : > { %v1230_v46 = vpop.f32.mrf.mxu0 }
 0x1db   : > { %v1231_v47 = vadd.f32 %v4000_v39, %v1230_v46 }
 0x1dd   : > { %2198 = vst [vmem:[%s4005_s4] sm:$0xff] %v1231_v47  ;;  %1594 = vmatmul.bf16.gmra.mxu0 %v3949_v20 }
 0x1de   : > { %v1247_v59 = vpop.f32.mrf.mxu2 }
 0x1df   : > { %v4034_v61 = vadd.f32 %v4000_v39, %v1247_v59 }
 0x1e0   : > { %v1347_v15 = vpop.f32.mrf.mxu3 }
 0x1e1   : > { %v1348_v49 = vadd.f32 %v4020_v48, %v1347_v15  ;;  %2205 = vst [vmem:[%s4005_s4 + $0x70] sm:$0xff] %v4034_v61 }
 0x1e2   : > { %v1232_v51 = vpop.f32.mrf.mxu0 }
 0x1e3   : > { %v1387_v54 = vmul.f32 0.5, %v1348_v49  ;;  %2214 = vst [vmem:[%s4005_s4 + $0x8] sm:$0xff] %v1348_v49  ;;  %v1233_v55 = vadd.f32 %v4000_v39, %v1232_v51 }
 0x1e5   : > { %2199 = vst [vmem:[%s4005_s4 + $0x10] sm:$0xff] %v1233_v55  ;;  %v1403_v56 = vmul.f32 1.442695, %v1387_v54  ;;  %v2904_v54 = vld [vmem:[#allocation17 + $0x38] sm:$0xff] }
 0x1e6   : > { %v1250_v5 = vpop.f32.mrf.mxu2  ;;  %1829 = vmatpush.bf16.msrb.mxu2 %v2904_v54 }
 0x1e7   : > { %3077 = vpow2.f32 %v1403_v56  ;;  %v4044_v7 = vadd.f32 %v4000_v39, %v1250_v5 }
 0x1e8   : > { %v1349_v57 = vpop.f32.mrf.mxu3 }
 0x1e9   : > { %v1350_v58 = vadd.f32 %v4020_v48, %v1349_v57  ;;  %2206 = vst [vmem:[%s4005_s4 + $0x80] sm:$0xff] %v4044_v7 }
 0x1ea   : > { %v1235_v60 = vpop.f32.mrf.mxu0 }
 0x1eb   : > { %v1388_v62 = vmul.f32 0.5, %v1350_v58  ;;  %2215 = vst [vmem:[%s4005_s4 + $0x18] sm:$0xff] %v1350_v58  ;;  %v1236_v63 = vadd.f32 %v4000_v39, %v1235_v60  ;;  %v1439_v58 = vld [vmem:[%s3917_s27 + $0x20] sm:$0xff] }
 0x1ed   : > { %v1405_v18 = vmul.f32 1.442695, %v1388_v62  ;;  %2200 = vst [vmem:[%s4005_s4 + $0x20] sm:$0xff] %v1236_v63  ;;  %v3078_v2 = vpop.eup %3077  ;;  %1599 = vmatmul.bf16.gmra.mxu0 %v3955_v25 }
 0x1ee   : > { %v1451_v11 = vmul.f32 %v3078_v2, %v1435_v4  ;;  %v1252_v22 = vpop.f32.mrf.mxu2  ;;  %v2903_v4 = vld [vmem:[#allocation17 + $0x30] sm:$0xff] }
 0x1ef   : > { %3079 = vpow2.f32 %v1405_v18  ;;  %v4055_v26 = vadd.f32 %v4000_v39, %v1252_v22  ;;  %1830 = vmatpush.bf16.msrb.mxu2 %v2903_v4  ;;  %v1442_v22 = vld [vmem:[%s3917_s27 + $0x38] sm:$0xff] }
 0x1f0   : > { %v1352_v1 = vpop.f32.mrf.mxu3  ;;  %v1467_v16 = vadd.f32 %v1451_v11, %v1231_v47 }
 0x1f1   : > { %v1353_v3 = vadd.f32 %v4020_v48, %v1352_v1  ;;  %2207 = vst [vmem:[%s4005_s4 + $0x90] sm:$0xff] %v4055_v26 }
 0x1f2   : > { %v1237_v6 = vpop.f32.mrf.mxu0 }
 0x1f3   : > { %v1389_v8 = vmul.f32 0.5, %v1353_v3  ;;  %2216 = vst [vmem:[%s4005_s4 + $0x28] sm:$0xff] %v1353_v3  ;;  %v1238_v9 = vadd.f32 %v4000_v39, %v1237_v6 }
 0x1f5   : > { %v3080_v12 = vpop.eup %3079  ;;  %2201 = vst [vmem:[%s4005_s4 + $0x30] sm:$0xff] %v1238_v9  ;;  %v1407_v13 = vmul.f32 1.442695, %v1389_v8 }
 0x1f6   : > { %v1452_v0 = vmul.f32 %v3080_v12, %v1436_v10  ;;  %v1255_v33 = vpop.f32.mrf.mxu2 }
 0x1f7   : > { %3081 = vpow2.f32 %v1407_v13  ;;  %v4063_v53 = vadd.f32 %v4000_v39, %v1255_v33 }
 0x1f8   : > { %v1354_v14 = vpop.f32.mrf.mxu3  ;;  %v1468_v19 = vadd.f32 %v1452_v0, %v1233_v55 }
 0x1f9   : > { %v1355_v21 = vadd.f32 %v4020_v48, %v1354_v14  ;;  %2208 = vst [vmem:[%s4005_s4 + $0xa0] sm:$0xff] %v4063_v53  ;;  %v1441_v14 = vld [vmem:[%s3917_s27 + $0x30] sm:$0xff] }
 0x1fa   : > { %v1483_v23 = vpack.c.bf16 %v1468_v19, %v1467_v16 }
 0x1fb   : > { %v1390_v17 = vmul.f32 0.5, %v1355_v21  ;;  %2217 = vst [vmem:[%s4005_s4 + $0x38] sm:$0xff] %v1355_v21 }
 0x1fc   : > { %1676 = vmatmul.bf16.vlgmr.msrb.gmra.mxu1 %v1483_v23 }
 0x1fd   : > { %v1409_v27 = vmul.f32 1.442695, %v1390_v17  ;;  %v3082_v24 = vpop.eup %3081  ;;  %1604 = vmatmul.bf16.gmra.mxu0 %v3961_v29 }
 0x1fe   : > { %v1453_v37 = vmul.f32 %v3082_v24, %v1437_v31  ;;  %v1257_v15 = vpop.f32.mrf.mxu2  ;;  %v2902_v24 = vld [vmem:[#allocation17 + $0x28] sm:$0xff] }
 0x1ff   : > { %3083 = vpow2.f32 %v1409_v27  ;;  %v4072_v50 = vadd.f32 %v4000_v39, %v1257_v15  ;;  %1831 = vmatpush.bf16.msrb.mxu2 %v2902_v24 }
 0x200   : > { %v1357_v28 = vpop.f32.mrf.mxu3  ;;  %v1469_v44 = vadd.f32 %v1453_v37, %v1236_v63  ;;  %v1440_v63 = vld [vmem:[%s3917_s27 + $0x28] sm:$0xff] }
 0x201   : > { %v1358_v30 = vadd.f32 %v4020_v48, %v1357_v28  ;;  %2209 = vst [vmem:[%s4005_s4 + $0xb0] sm:$0xff] %v4072_v50 }
 0x203   : > { %v1391_v35 = vmul.f32 0.5, %v1358_v30  ;;  %2218 = vst [vmem:[%s4005_s4 + $0x48] sm:$0xff] %v1358_v30 }
 0x205   : > { %v3084_v38 = vpop.eup %3083  ;;  %v1411_v41 = vmul.f32 1.442695, %v1391_v35 }
 0x206   : > { %v1454_v40 = vmul.f32 %v3084_v38, %v1438_v36  ;;  %v1260_v59 = vpop.f32.mrf.mxu2 }
 0x207   : > { %3085 = vpow2.f32 %v1411_v41  ;;  %v4080_v60 = vadd.f32 %v4000_v39, %v1260_v59 }
 0x208   : > { %v1359_v43 = vpop.f32.mrf.mxu3  ;;  %v1470_v46 = vadd.f32 %v1454_v40, %v1238_v9 }
 0x209   : > { %v1360_v47 = vadd.f32 %v4020_v48, %v1359_v43  ;;  %2210 = vst [vmem:[%s4005_s4 + $0xc0] sm:$0xff] %v4080_v60 }
 0x20a   : > { %v1484_v49 = vpack.c.bf16 %v1470_v46, %v1469_v44  ;;  %v1443_v44 = vld [vmem:[%s3917_s27 + $0x40] sm:$0xff] }
 0x20b   : > { %v1392_v51 = vmul.f32 0.5, %v1360_v47  ;;  %2219 = vst [vmem:[%s4005_s4 + $0x58] sm:$0xff] %v1360_v47 }
 0x20c   : > { %1681 = vmatmul.bf16.gmra.mxu1 %v1484_v49 }
 0x20d   : > { %v1413_v20 = vmul.f32 1.442695, %v1392_v51  ;;  %v3086_v56 = vpop.eup %3085  ;;  %1609 = vmatmul.bf16.gmra.mxu0 %v3966_v32  ;;  %v2900_v32 = vld [vmem:[#allocation17 + $0x18] sm:$0xff] }
 0x20e   : > { %v1455_v18 = vmul.f32 %v3086_v56, %v1439_v58  ;;  %v1262_v10 = vpop.f32.mrf.mxu2 }
 0x20f   : > { %3087 = vpow2.f32 %v1413_v20  ;;  %v4091_v12 = vadd.f32 %v4000_v39, %v1262_v10 }
 0x210   : > { %v1362_v55 = vpop.f32.mrf.mxu3  ;;  %v1471_v6 = vadd.f32 %v1455_v18, %v4003_v42 }
 0x211   : > { %v1363_v57 = vadd.f32 %v4020_v48, %v1362_v55  ;;  %2211 = vst [vmem:[%s4005_s4 + $0xd0] sm:$0xff] %v4091_v12 }
 0x213   : > { %v1393_v62 = vmul.f32 0.5, %v1363_v57  ;;  %2220 = vst [vmem:[%s4005_s4 + $0x68] sm:$0xff] %v1363_v57 }
 0x215   : > { %v3088_v1 = vpop.eup %3087  ;;  %v1415_v3 = vmul.f32 1.442695, %v1393_v62 }
 0x216   : > { %v1456_v2 = vmul.f32 %v3088_v1, %v1440_v63  ;;  %v1265_v16 = vpop.f32.mrf.mxu2  ;;  %v1445_v1 = vld [vmem:[%s3917_s27 + $0x50] sm:$0xff] }
 0x217   : > { %3089 = vpow2.f32 %v1415_v3  ;;  %v4099_v19 = vadd.f32 %v4000_v39, %v1265_v16  ;;  %v1448_v16 = vld [vmem:[%s3917_s27 + $0x68] sm:$0xff] }
 0x218   : > { %v1364_v5 = vpop.f32.mrf.mxu3  ;;  %v1472_v8 = vadd.f32 %v1456_v2, %v4011_v45  ;;  %v1446_v2 = vld [vmem:[%s3917_s27 + $0x58] sm:$0xff] }
 0x219   : > { %v1365_v9 = vadd.f32 %v4020_v48, %v1364_v5  ;;  %2212 = vst [vmem:[%s4005_s4 + $0xe0] sm:$0xff] %v4099_v19 }
 0x21a   : > { %v1485_v11 = vpack.c.bf16 %v1472_v8, %v1471_v6 }
 0x21b   : > { %v1394_v25 = vmul.f32 0.5, %v1365_v9  ;;  %2221 = vst [vmem:[%s4005_s4 + $0x78] sm:$0xff] %v1365_v9 }
 0x21c   : > { %1686 = vmatmul.bf16.gmra.mxu1 %v1485_v11 }
 0x21d   : > { %v1417_v42 = vmul.f32 1.442695, %v1394_v25  ;;  %v3090_v0 = vpop.eup %3089  ;;  %1614 = vmatmul.bf16.gmra.mxu0 %v3971_v34  ;;  %v2898_v34 = vld [vmem:[#allocation17 + $0x8] sm:$0xff] }
 0x21e   : > { %v1457_v23 = vmul.f32 %v3090_v0, %v1441_v14  ;;  %v1267_v36 = vpop.f32.mrf.mxu2 }
 0x21f   : > { %3091 = vpow2.f32 %v1417_v42  ;;  %v4110_v38 = vadd.f32 %v4000_v39, %v1267_v36  ;;  %v1444_v39 = vld [vmem:[%s3917_s27 + $0x48] sm:$0xff] }
 0x220   : > { %v1367_v45 = vpop.f32.mrf.mxu3  ;;  %v1473_v31 = vadd.f32 %v1457_v23, %v4024_v52 }
 0x221   : > { %v1368_v13 = vadd.f32 %v4020_v48, %v1367_v45  ;;  %2213 = vst [vmem:[%s4005_s4 + $0xf0] sm:$0xff] %v4110_v38 }
 0x223   : > { %v1395_v21 = vmul.f32 0.5, %v1368_v13  ;;  %2222 = vst [vmem:[%s4005_s4 + $0x88] sm:$0xff] %v1368_v13 }
 0x225   : > { %v3092_v17 = vpop.eup %3091  ;;  %v1419_v28 = vmul.f32 1.442695, %v1395_v21 }
 0x226   : > { %v1458_v27 = vmul.f32 %v3092_v17, %v1442_v22 }
 0x227   : > { %3093 = vpow2.f32 %v1419_v28 }
 0x228   : > { %v1369_v30 = vpop.f32.mrf.mxu3  ;;  %v1474_v33 = vadd.f32 %v1458_v27, %v4034_v61  ;;  %v2901_v61 = vld [vmem:[#allocation17 + $0x20] sm:$0xff] }
 0x229   : > { %v1370_v35 = vadd.f32 %v4020_v48, %v1369_v30  ;;  %1832 = vmatpush.bf16.msrb.mxu2 %v2901_v61  ;;  %v1450_v61 = vld [vmem:[%s3917_s27 + $0x78] sm:$0xff] }
 0x22a   : > { %v1486_v37 = vpack.c.bf16 %v1474_v33, %v1473_v31 }
 0x22b   : > { %v1396_v29 = vmul.f32 0.5, %v1370_v35  ;;  %2223 = vst [vmem:[%s4005_s4 + $0x98] sm:$0xff] %v1370_v35  ;;  %v1580_v35 = vpop.f32.mrf.mxu0 }
 0x22c   : > { %1691 = vmatmul.bf16.gmra.mxu1 %v1486_v37  ;;  %v2897_v37 = vld [vmem:[#allocation17] sm:$0xff] }
 0x22d   : > { %v1421_v52 = vmul.f32 1.442695, %v1396_v29  ;;  %v3094_v41 = vpop.eup %3093  ;;  %1833 = vmatpush.bf16.msrb.mxu2 %v2900_v32 }
 0x22e   : > { %v1459_v47 = vmul.f32 %v3094_v41, %v1443_v44 }
 0x22f   : > { %3095 = vpow2.f32 %v1421_v52  ;;  %v1449_v52 = vld [vmem:[%s3917_s27 + $0x70] sm:$0xff] }
 0x230   : > { %v1372_v40 = vpop.f32.mrf.mxu3  ;;  %v1475_v54 = vadd.f32 %v1459_v47, %v4044_v7  ;;  %v2899_v7 = vld [vmem:[#allocation17 + $0x10] sm:$0xff] }
 0x231   : > { %v1373_v43 = vadd.f32 %v4020_v48, %v1372_v40  ;;  %1834 = vmatpush.bf16.msrb.mxu2 %v2899_v7 }
 0x233   : > { %v1397_v46 = vmul.f32 0.5, %v1373_v43  ;;  %2224 = vst [vmem:[%s4005_s4 + $0xa8] sm:$0xff] %v1373_v43 }
 0x235   : > { %v3096_v15 = vpop.eup %3095  ;;  %v1423_v51 = vmul.f32 1.442695, %v1397_v46  ;;  %1835 = vmatpush.bf16.msrb.mxu2 %v2898_v34 }
 0x236   : > { %v1460_v49 = vmul.f32 %v3096_v15, %v1444_v39 }
 0x237   : > { %3097 = vpow2.f32 %v1423_v51 }
 0x238   : > { %v1374_v20 = vpop.f32.mrf.mxu3  ;;  %v1476_v55 = vadd.f32 %v1460_v49, %v4055_v26  ;;  %v4148_v49 = vld [vmem:[%s4347_s12] ss:$0 sm:$0xff] }
 0x239   : > { %v1375_v56 = vadd.f32 %v4020_v48, %v1374_v20  ;;  %1836 = vmatpush.bf16.msrb.mxu2 %v2897_v37 }
 0x23a   : > { %v1487_v57 = vpack.c.bf16 %v1476_v55, %v1475_v54 }
 0x23b   : > { %v1398_v58 = vmul.f32 0.5, %v1375_v56  ;;  %2225 = vst [vmem:[%s4005_s4 + $0xb8] sm:$0xff] %v1375_v56 }
 0x23c   : > { %1696 = vmatmul.bf16.gmra.mxu1 %v1487_v57 }
 0x23d   : > { %v1425_v59 = vmul.f32 1.442695, %v1398_v58  ;;  %v3098_v63 = vpop.eup %3097 }
 0x23e   : > { %v1461_v3 = vmul.f32 %v3098_v63, %v1445_v1 }
 0x23f   : > { %3099 = vpow2.f32 %v1425_v59 }
 0x240   : > { %v1377_v62 = vpop.f32.mrf.mxu3  ;;  %v1477_v9 = vadd.f32 %v1461_v3, %v4063_v53  ;;  %v1447_v53 = vld [vmem:[%s3917_s27 + $0x60] sm:$0xff]  ;;  %s4349_s27 = sld [smem:[#allocation46_spill]] }
 0x241   : > { %v1378_v18 = vadd.f32 %v4020_v48, %v1377_v62 }
 0x243   : > { %v1399_v26 = vmul.f32 0.5, %v1378_v18  ;;  %2226 = vst [vmem:[%s4005_s4 + $0xc8] sm:$0xff] %v1378_v18 }
 0x245   : > { %v3100_v4 = vpop.eup %3099  ;;  %v1427_v6 = vmul.f32 1.442695, %v1399_v26 }
 0x246   : > { %v1462_v5 = vmul.f32 %v3100_v4, %v1446_v2  ;;  %s2265_s30 = scalar_lea.hbm %s4349_s27, %s2907_s14  ;;  %s3493_s16 = scalar_lea.hbm %s4349_s27, 512 }
 0x247   : > { %3101 = vpow2.f32 %v1427_v6  ;;  %s2268_s25 = sshll.u32 %s2265_s30, 4  ;;  %s2269_s25 = int_to_ptr.hbm [resolvable:$true] %s2268_s25 }
 0x248   : > { %v1379_v8 = vpop.f32.mrf.mxu3  ;;  %v1478_v10 = vadd.f32 %v1462_v5, %v4072_v50  ;;  %s3487_s3 = sshra.s32 %s2269_s25, 4  ;;  %s3488_s3 = int_to_ptr.hbm [resolvable:$true] %s3487_s3 }
 0x249   : > { %v1380_v11 = vadd.f32 %v4020_v48, %v1379_v8  ;;  %p3494_p12 = scmp.lt.s32.totalorder %s3488_s3, %s4349_s27 }
 0x24a   : > { %v1488_v25 = vpack.c.bf16 %v1478_v10, %v1477_v9 }
 0x24b   : > { %v1400_v42 = vmul.f32 0.5, %v1380_v11  ;;  %2227 = vst [vmem:[%s4005_s4 + $0xd8] sm:$0xff] %v1380_v11 }
 0x24c   : > { %1701 = vmatmul.bf16.gmra.mxu1 %v1488_v25 }
 0x24d   : > { %v1429_v45 = vmul.f32 1.442695, %v1400_v42  ;;  %v3102_v13 = vpop.eup %3101 }
 0x24e   : > { %v1463_v21 = vmul.f32 %v3102_v13, %v1447_v53 }
 0x24f   : > { %3103 = vpow2.f32 %v1429_v45 }
 0x250   : > { %v1382_v0 = vpop.f32.mrf.mxu3  ;;  %v1479_v28 = vadd.f32 %v1463_v21, %v4080_v60  ;;  %v1582_v60 = vpop.f32.mrf.mxu0 }
 0x251   : > { %v1383_v14 = vadd.f32 %v4020_v48, %v1382_v0 }
 0x253   : > { %v1401_v50 = vmul.f32 0.5, %v1383_v14  ;;  %2228 = vst [vmem:[%s4005_s4 + $0xe8] sm:$0xff] %v1383_v14 }
 0x255   : > { %v3104_v22 = vpop.eup %3103  ;;  %v1431_v17 = vmul.f32 1.442695, %v1401_v50 }
 0x256   : > { %v1464_v23 = vmul.f32 %v3104_v22, %v1448_v16 }
 0x257   : > { %3105 = vpow2.f32 %v1431_v17 }
 0x258   : > { %v1384_v27 = vpop.f32.mrf.mxu3  ;;  %v1480_v24 = vadd.f32 %v1464_v23, %v4091_v12  ;;  %v1585_v46 = vpop.f32.mrf.mxu0 }
 0x259   : > { %v1385_v30 = vadd.f32 %v4020_v48, %v1384_v27 }
 0x25a   : > { %v1489_v31 = vpack.c.bf16 %v1480_v24, %v1479_v28 }
 0x25b   : > { %v1402_v33 = vmul.f32 0.5, %v1385_v30  ;;  %2229 = vst [vmem:[%s4005_s4 + $0xf8] sm:$0xff] %v1385_v30  ;;  %s3489_s4 = scalar_lea.hbm %s3488_s3, 256 }
 0x25c   : > { %1706 = vmatmul.bf16.gmra.mxu1 %v1489_v31  ;;  %p3490_p10 = scmp.ne.s32.totalorder %s3488_s3, %s3489_s4  ;;  %p3495_p3 = scmp.lt.s32.totalorder %s3493_s16, %s3489_s4 }
 0x25d   : > { %v1433_v36 = vmul.f32 1.442695, %v1402_v33  ;;  %v3106_v29 = vpop.eup %3105 }
 0x25e   : > { %v1465_v40 = vmul.f32 %v3106_v29, %v1449_v52  ;;  %p3491_p6 = pnand %p3490_p10, %p3778_p0  ;;  %p3496_p8 = por %p3495_p3, %p3494_p12 }
 0x25f   : > { %3107 = vpow2.f32 %v1433_v36 }
 0x260   : > { %v1481_v12 = vadd.f32 %v1465_v40, %v4099_v19  ;;  %v1587_v47 = vpop.f32.mrf.mxu0  ;;  %p3492_p11 = pneg %p3491_p6 }
 0x262   : > { %p3497_p9 = pnand %p3496_p8, %p3492_p11 }
 0x265   : > { %v3108_v41 = vpop.eup %3107 }
 0x266   : > { %v1466_v43 = vmul.f32 %v3108_v41, %v1450_v61 }
 0x268   : > { %v1482_v48 = vadd.f32 %v1466_v43, %v4110_v38  ;;  %v1590_v55 = vpop.f32.mrf.mxu0 }
 0x26a   : > { %v1490_v44 = vpack.c.bf16 %v1482_v48, %v1481_v12 }
 0x26c   : > { %1711 = vmatmul.bf16.gmra.mxu1 %v1490_v44 }
 0x270   : > { %v1592_v59 = vpop.f32.mrf.mxu0 }
 0x278   : > { %v1595_v2 = vpop.f32.mrf.mxu0 }
 0x279   : > { %v1677_v39 = vpop.f32.mrf.mxu1 }
 0x27a   : > { %v1678_v15 = vadd.f32 %v1677_v39, %v1580_v35 }
 0x27c   : > { %v1721_v20 = vadd.f32 %v4148_v49, %v1678_v15 }
 0x27e   : > { %v1737_v56 = vmax.f32 %v1721_v20, 0.0 }
 0x280   : > { %v1597_v8 = vpop.f32.mrf.mxu0 }
 0x281   : > { %v1679_v51 = vpop.f32.mrf.mxu1 }
 0x282   : > { %v1680_v54 = vadd.f32 %v1679_v51, %v1582_v60 }
 0x284   : > { %v1722_v19 = vadd.f32 %v4148_v49, %v1680_v54 }
 0x286   : > { %v1738_v38 = vmax.f32 %v1722_v19, 0.0 }
 0x288   : > { %v1753_v57 = vpack.c.bf16 %v1738_v38, %v1737_v56  ;;  %v1600_v0 = vpop.f32.mrf.mxu0 }
 0x289   : > { %v1682_v58 = vpop.f32.mrf.mxu1 }
 0x28a   : > { %1837 = vmatmul.bf16.vlgmr.msrb.gmra.mxu2 %v1753_v57  ;;  %v1683_v32 = vadd.f32 %v1682_v58, %v1585_v46 }
 0x28c   : > { %v1723_v63 = vadd.f32 %v4148_v49, %v1683_v32 }
 0x28e   : > { %v1739_v7 = vmax.f32 %v1723_v63, 0.0 }
 0x290   : > { %v1602_v21 = vpop.f32.mrf.mxu0 }
 0x291   : > { %v1684_v62 = vpop.f32.mrf.mxu1 }
 0x292   : > { %v1685_v18 = vadd.f32 %v1684_v62, %v1587_v47 }
 0x294   : > { %v1724_v1 = vadd.f32 %v4148_v49, %v1685_v18 }
 0x296   : > { %v1740_v26 = vmax.f32 %v1724_v1, 0.0 }
 0x298   : > { %v1754_v3 = vpack.c.bf16 %v1740_v26, %v1739_v7  ;;  %v1605_v24 = vpop.f32.mrf.mxu0 }
 0x299   : > { %v1687_v4 = vpop.f32.mrf.mxu1 }
 0x29a   : > { %1842 = vmatmul.bf16.gmra.mxu2 %v1754_v3  ;;  %v1688_v5 = vadd.f32 %v1687_v4, %v1590_v55  ;;  %v4169_v4 = vld [vmem:[%s4348_s10] ss:$0 sm:$0xff] }
 0x29c   : > { %v1725_v9 = vadd.f32 %v4148_v49, %v1688_v5 }
 0x29e   : > { %v1741_v25 = vmax.f32 %v1725_v9, 0.0 }
 0x2a0   : > { %v1607_v52 = vpop.f32.mrf.mxu0 }
 0x2a1   : > { %v1689_v6 = vpop.f32.mrf.mxu1 }
 0x2a2   : > { %v1690_v10 = vadd.f32 %v1689_v6, %v1592_v59 }
 0x2a4   : > { %v1726_v11 = vadd.f32 %v4148_v49, %v1690_v10 }
 0x2a6   : > { %v1742_v42 = vmax.f32 %v1726_v11, 0.0 }
 0x2a8   : > { %v1755_v34 = vpack.c.bf16 %v1742_v42, %v1741_v25  ;;  %v1610_v12 = vpop.f32.mrf.mxu0 }
 0x2a9   : > { %v1692_v45 = vpop.f32.mrf.mxu1 }
 0x2aa   : > { %1847 = vmatmul.bf16.gmra.mxu2 %v1755_v34  ;;  %v1693_v13 = vadd.f32 %v1692_v45, %v1595_v2 }
 0x2ac   : > { %v1727_v53 = vadd.f32 %v4148_v49, %v1693_v13 }
 0x2ae   : > { %v1743_v22 = vmax.f32 %v1727_v53, 0.0 }
 0x2b0   : > { %v1612_v15 = vpop.f32.mrf.mxu0 }
 0x2b1   : > { %v1694_v14 = vpop.f32.mrf.mxu1 }
 0x2b2   : > { %v1695_v50 = vadd.f32 %v1694_v14, %v1597_v8 }
 0x2b4   : > { %v1728_v16 = vadd.f32 %v4148_v49, %v1695_v50 }
 0x2b6   : > { %v1744_v23 = vmax.f32 %v1728_v16, 0.0 }
 0x2b8   : > { %v1756_v17 = vpack.c.bf16 %v1744_v23, %v1743_v22  ;;  %v1615_v57 = vpop.f32.mrf.mxu0 }
 0x2b9   : > { %v1697_v27 = vpop.f32.mrf.mxu1 }
 0x2ba   : > { %1852 = vmatmul.bf16.gmra.mxu2 %v1756_v17  ;;  %v1698_v28 = vadd.f32 %v1697_v27, %v1600_v0 }
 0x2bc   : > { %v1729_v31 = vadd.f32 %v4148_v49, %v1698_v28 }
 0x2be   : > { %v1745_v36 = vmax.f32 %v1729_v31, 0.0 }
 0x2c0   : > { %v1617_v62 = vpop.f32.mrf.mxu0 }
 0x2c1   : > { %v1699_v30 = vpop.f32.mrf.mxu1 }
 0x2c2   : > { %v1700_v33 = vadd.f32 %v1699_v30, %v1602_v21 }
 0x2c4   : > { %v1730_v35 = vadd.f32 %v4148_v49, %v1700_v33 }
 0x2c6   : > { %v1746_v37 = vmax.f32 %v1730_v35, 0.0 }
 0x2c8   : > { %v1757_v29 = vpack.c.bf16 %v1746_v37, %v1745_v36 }
 0x2c9   : > { %v1702_v61 = vpop.f32.mrf.mxu1 }
 0x2ca   : > { %1857 = vmatmul.bf16.gmra.mxu2 %v1757_v29  ;;  %v1703_v40 = vadd.f32 %v1702_v61, %v1605_v24 }
 0x2cc   : > { %v1731_v60 = vadd.f32 %v4148_v49, %v1703_v40 }
 0x2ce   : > { %v1747_v44 = vmax.f32 %v1731_v60, 0.0 }
 0x2d1   : > { %v1704_v41 = vpop.f32.mrf.mxu1 }
 0x2d2   : > { %v1705_v43 = vadd.f32 %v1704_v41, %v1607_v52 }
 0x2d4   : > { %v1732_v48 = vadd.f32 %v4148_v49, %v1705_v43 }
 0x2d6   : > { %v1748_v46 = vmax.f32 %v1732_v48, 0.0 }
 0x2d8   : > { %v1758_v39 = vpack.c.bf16 %v1748_v46, %v1747_v44 }
 0x2d9   : > { %v1707_v47 = vpop.f32.mrf.mxu1 }
 0x2da   : > { %1862 = vmatmul.bf16.gmra.mxu2 %v1758_v39  ;;  %v1708_v51 = vadd.f32 %v1707_v47, %v1610_v12 }
 0x2dc   : > { %v1733_v54 = vadd.f32 %v4148_v49, %v1708_v51 }
 0x2de   : > { %v1749_v56 = vmax.f32 %v1733_v54, 0.0 }
 0x2e1   : > { %v1709_v20 = vpop.f32.mrf.mxu1 }
 0x2e2   : > { %v1710_v55 = vadd.f32 %v1709_v20, %v1612_v15 }
 0x2e4   : > { %v1734_v19 = vadd.f32 %v4148_v49, %v1710_v55 }
 0x2e6   : > { %v1750_v38 = vmax.f32 %v1734_v19, 0.0 }
 0x2e8   : > { %v1759_v58 = vpack.c.bf16 %v1750_v38, %v1749_v56 }
 0x2e9   : > { %v1712_v59 = vpop.f32.mrf.mxu1 }
 0x2ea   : > { %1867 = vmatmul.bf16.gmra.mxu2 %v1759_v58  ;;  %v1713_v32 = vadd.f32 %v1712_v59, %v1615_v57 }
 0x2ec   : > { %v1735_v18 = vadd.f32 %v4148_v49, %v1713_v32 }
 0x2ee   : > { %v1751_v26 = vmax.f32 %v1735_v18, 0.0 }
 0x2f1   : > { %v1714_v63 = vpop.f32.mrf.mxu1 }
 0x2f2   : > { %v1715_v1 = vadd.f32 %v1714_v63, %v1617_v62 }
 0x2f4   : > { %v1736_v7 = vadd.f32 %v4148_v49, %v1715_v1 }
 0x2f6   : > { %v1752_v2 = vmax.f32 %v1736_v7, 0.0 }
 0x2f8   : > { %v1760_v3 = vpack.c.bf16 %v1752_v2, %v1751_v26 }
 0x2fa   : > { %1872 = vmatmul.bf16.gmra.mxu2 %v1760_v3 }
 0x30d   : > { %v1838_v5 = vpop.f32.mrf.mxu2 }
 0x30e   : > { %v1839_v6 = vadd.f32 %v4169_v4, %v1838_v5 }
 0x310   : > { %v2805_v8 = vmul.f32 -1.442695, %v1839_v6 }
 0x312   : > { %3109 = vpow2.f32 %v2805_v8 }
 0x315   : > { %v1840_v9 = vpop.f32.mrf.mxu2 }
 0x316   : > { %v1841_v10 = vadd.f32 %v4169_v4, %v1840_v9 }
 0x318   : > { %v3110_v11 = vpop.eup %3109  ;;  %v2806_v49 = vmul.f32 -1.442695, %v1841_v10 }
 0x319   : > { %v1926_v25 = vadd.f32 1.0, %v3110_v11 }
 0x31a   : > { %3111 = vpow2.f32 %v2806_v49 }
 0x31b   : > { %3113 = vrcp.f32 %v1926_v25  ;;  %v1953_v16 = vand.u32 2147483648, %v1926_v25  ;;  %v1951_v23 = vand.u32 2147483647, %v1926_v25  ;;  %vm1947_vm1 = vweird.f32 %v1926_v25 }
 0x31d   : > { %v1843_v42 = vpop.f32.mrf.mxu2  ;;  %v1954_v31 = vor.u32 1.1754944e-38, %v1953_v16  ;;  %vm1952_vm3 = vcmp.eq.f32.partialorder %v1951_v23, 8.507059e+37 }
 0x31e   : > { %v1844_v34 = vadd.f32 %v4169_v4, %v1843_v42 }
 0x320   : > { %v3112_v45 = vpop.eup %3111  ;;  %v2807_v0 = vmul.f32 -1.442695, %v1844_v34 }
 0x321   : > { %v3114_v13 = vpop.eup %3113  ;;  %v4174_v14 = vadd.f32 1.0, %v3112_v45 }
 0x322   : > { %v1943_v53 = vmul.f32 %v3114_v13, %v1926_v25  ;;  %3115 = vpow2.f32 %v2807_v0  ;;  %vm1948_vm0 = vweird.f32 %v3114_v13 }
 0x323   : > { %3117 = vrcp.f32 %v4174_v14  ;;  %vm1949_vm2 = vmor %vm1947_vm1, %vm1948_vm0 }
 0x324   : > { %v1944_v50 = vsub.f32 1.0, %v1943_v53 }
 0x325   : > { %v1845_v21 = vpop.f32.mrf.mxu2 }
 0x326   : > { %v1945_v22 = vmul.f32 %v3114_v13, %v1944_v50  ;;  %v1846_v17 = vadd.f32 %v4169_v4, %v1845_v21 }
 0x328   : > { %v3116_v27 = vpop.eup %3115  ;;  %v1946_v28 = vadd.f32 %v3114_v13, %v1945_v22  ;;  %v2808_v24 = vmul.f32 -1.442695, %v1846_v17 }
 0x329   : > { %v3118_v30 = vpop.eup %3117  ;;  %v4183_v33 = vadd.f32 1.0, %v3116_v27 }
 0x32a   : > { %v1950_v35 = vsel %vm1949_vm2, %v3114_v13, %v1946_v28  ;;  %v1958_v36 = vmul.f32 %v3118_v30, %v4174_v14  ;;  %3119 = vpow2.f32 %v2808_v24 }
 0x32b   : > { %v1955_v37 = vsel %vm1952_vm3, %v1954_v31, %v1950_v35  ;;  %3121 = vrcp.f32 %v4183_v33 }
 0x32c   : > { %3500 = shalt.err (!%p3497_p9)
}
 0x32d   : > { %s3604_s21 = smov 256   ;;  %s3605_s26 = smov 16   ;;  %v1959_v29 = vsub.f32 1.0, %v1958_v36  ;;  %v1968_v52 = vand.u32 2147483648, %v4174_v14  ;;  %v1848_v61 = vpop.f32.mrf.mxu2  ;;  %vm1963_vm4 = vweird.f32 %v3118_v30  ;;  %v1966_v41 = vand.u32 2147483647, %v4174_v14 }
 0x32e   : > { %2967 = dma.vmem_to_hbm [thread:$0]  (%p3778_p0), %s2267_s23, 4096, %s2269_s25, %s2236_s0, %s3604_s21, %s3604_s21, %s3605_s26   ;;  %v1849_v60 = vadd.f32 %v4169_v4, %v1848_v61  ;;  %vm1962_vm5 = vweird.f32 %v4174_v14  ;;  %v1983_v54 = vand.u32 2147483648, %v4183_v33  ;;  %v1981_v56 = vand.u32 2147483647, %v4183_v33 }
 0x32f   : > { %s4200_s10 = scalar_lea.vmem [#allocation19], %s2507_s20  ;;  %v1960_v40 = vmul.f32 %v3118_v30, %v1959_v29  ;;  %vm1964_vm6 = vmor %vm1962_vm5, %vm1963_vm4  ;;  %v1969_v46 = vor.u32 1.1754944e-38, %v1968_v52  ;;  %vm1967_vm7 = vcmp.eq.f32.partialorder %v1966_v41, 8.507059e+37  ;;  %vm1977_vm9 = vweird.f32 %v4183_v33  ;;  %s2905_s20 = sshll.u32 %s3717_s28, 7 }
 0x330   : > { %2182 = vst [vmem:[%s4200_s10] sm:$0xff] %v1955_v37  ;;  %v3120_v43 = vpop.eup %3119  ;;  %v2809_v48 = vmul.f32 -1.442695, %v1849_v60  ;;  %v1984_v62 = vor.u32 1.1754944e-38, %v1983_v54  ;;  %vm1982_vm11 = vcmp.eq.f32.partialorder %v1981_v56, 8.507059e+37  ;;  %s4351_s18 = sld [smem:[#allocation45_spill]]  ;;  %s2248_s28 = sshll.u32 %s4200_s10, 4  ;;  %s2249_s28 = int_to_ptr.vmem [resolvable:$true] %s2248_s28 }
 0x331   : > { %v1961_v12 = vadd.f32 %v3118_v30, %v1960_v40  ;;  %v3122_v44 = vpop.eup %3121  ;;  %v1929_v39 = vadd.f32 1.0, %v3120_v43  ;;  %s2231_s25 = scalar_lea.sflag [#allocation4], %s3897_s1 }
 0x332   : > { %v1973_v15 = vmul.f32 %v3122_v44, %v4183_v33  ;;  %3123 = vpow2.f32 %v2809_v48  ;;  %vm1978_vm8 = vweird.f32 %v3122_v44 }
 0x333   : > { %v1965_v47 = vsel %vm1964_vm6, %v3118_v30, %v1961_v12  ;;  %3125 = vrcp.f32 %v1929_v39  ;;  %vm1979_vm10 = vmor %vm1977_vm9, %vm1978_vm8  ;;  %v1998_v2 = vand.u32 2147483648, %v1929_v39  ;;  %v1996_v6 = vand.u32 2147483647, %v1929_v39 }
 0x334   : > { %v1970_v51 = vsel %vm1967_vm7, %v1969_v46, %v1965_v47  ;;  %v1974_v20 = vsub.f32 1.0, %v1973_v15  ;;  %vm1992_vm13 = vweird.f32 %v1929_v39 }
 0x335   : > { %2183 = vst [vmem:[%s4200_s10 + $0x8] sm:$0xff] %v1970_v51  ;;  %v1850_v55 = vpop.f32.mrf.mxu2  ;;  %v1999_v25 = vor.u32 1.1754944e-38, %v1998_v2  ;;  %vm1997_vm15 = vcmp.eq.f32.partialorder %v1996_v6, 8.507059e+37 }
 0x336   : > { %v1975_v19 = vmul.f32 %v3122_v44, %v1974_v20  ;;  %v1851_v38 = vadd.f32 %v4169_v4, %v1850_v55  ;;  %s2247_s30 = scalar_lea.hbm %s4351_s18, %s2905_s20  ;;  %s3521_s17 = scalar_lea.hbm %s4351_s18, 256 }
 0x337   : > { %s2250_s23 = sshll.u32 %s2247_s30, 4  ;;  %s2251_s23 = int_to_ptr.hbm [resolvable:$true] %s2250_s23 }
 0x338   : > { %v3124_v57 = vpop.eup %3123  ;;  %v1976_v58 = vadd.f32 %v3122_v44, %v1975_v19  ;;  %v2810_v59 = vmul.f32 -1.442695, %v1851_v38  ;;  %s3515_s0 = sshra.s32 %s2251_s23, 4  ;;  %s3516_s0 = int_to_ptr.hbm [resolvable:$true] %s3515_s0 }
 0x339   : > { %v3126_v32 = vpop.eup %3125  ;;  %v1930_v63 = vadd.f32 1.0, %v3124_v57  ;;  %s3517_s3 = scalar_lea.hbm %s3516_s0, 128  ;;  %p3522_p1 = scmp.lt.s32.totalorder %s3516_s0, %s4351_s18 }
 0x33a   : > { %v1980_v18 = vsel %vm1979_vm10, %v3122_v44, %v1976_v58  ;;  %v1988_v1 = vmul.f32 %v3126_v32, %v1929_v39  ;;  %3127 = vpow2.f32 %v2810_v59  ;;  %vm1993_vm12 = vweird.f32 %v3126_v32  ;;  %p3518_p2 = scmp.ne.s32.totalorder %s3516_s0, %s3517_s3  ;;  %p3523_p7 = scmp.lt.s32.totalorder %s3521_s17, %s3517_s3 }
 0x33b   : > { %v1985_v7 = vsel %vm1982_vm11, %v1984_v62, %v1980_v18  ;;  %3129 = vrcp.f32 %v1930_v63  ;;  %vm1994_vm14 = vmor %vm1992_vm13, %vm1993_vm12  ;;  %v2013_v14 = vand.u32 2147483648, %v1930_v63  ;;  %v2011_v16 = vand.u32 2147483647, %v1930_v63 }
 0x33c   : > { %2184 = vst [vmem:[%s4200_s10 + $0x10] sm:$0xff] %v1985_v7  ;;  %v1989_v26 = vsub.f32 1.0, %v1988_v1  ;;  %vm2007_vm1 = vweird.f32 %v1930_v63  ;;  %p3519_p13 = pnand %p3518_p2, %p3778_p0  ;;  %p3524_p10 = por %p3523_p7, %p3522_p1 }
 0x33d   : > { %v1853_v3 = vpop.f32.mrf.mxu2  ;;  %v2014_v28 = vor.u32 1.1754944e-38, %v2013_v14  ;;  %vm2012_vm3 = vcmp.eq.f32.partialorder %v2011_v16, 8.507059e+37 }
 0x33e   : > { %v1990_v5 = vmul.f32 %v3126_v32, %v1989_v26  ;;  %v1854_v8 = vadd.f32 %v4169_v4, %v1853_v3  ;;  %p3520_p4 = pneg %p3519_p13 }
 0x340   : > { %v3128_v9 = vpop.eup %3127  ;;  %v1991_v10 = vadd.f32 %v3126_v32, %v1990_v5  ;;  %v2811_v11 = vmul.f32 -1.442695, %v1854_v8  ;;  %p3525_p6 = pnand %p3524_p10, %p3520_p4 }
 0x341   : > { %v3130_v49 = vpop.eup %3129  ;;  %v1931_v42 = vadd.f32 1.0, %v3128_v9 }
 0x342   : > { %v1995_v34 = vsel %vm1994_vm14, %v3126_v32, %v1991_v10  ;;  %v2003_v45 = vmul.f32 %v3130_v49, %v1930_v63  ;;  %3131 = vpow2.f32 %v2811_v11  ;;  %vm2008_vm0 = vweird.f32 %v3130_v49 }
 0x343   : > { %v2000_v0 = vsel %vm1997_vm15, %v1999_v25, %v1995_v34  ;;  %3133 = vrcp.f32 %v1931_v42  ;;  %vm2009_vm2 = vmor %vm2007_vm1, %vm2008_vm0  ;;  %v2028_v36 = vand.u32 2147483648, %v1931_v42  ;;  %v2026_v52 = vand.u32 2147483647, %v1931_v42 }
 0x344   : > { %2185 = vst [vmem:[%s4200_s10 + $0x18] sm:$0xff] %v2000_v0  ;;  %v2004_v13 = vsub.f32 1.0, %v2003_v45  ;;  %vm2022_vm5 = vweird.f32 %v1931_v42 }
 0x345   : > { %v1855_v53 = vpop.f32.mrf.mxu2  ;;  %v2029_v12 = vor.u32 1.1754944e-38, %v2028_v36  ;;  %vm2027_vm7 = vcmp.eq.f32.partialorder %v2026_v52, 8.507059e+37 }
 0x346   : > { %v2005_v50 = vmul.f32 %v3130_v49, %v2004_v13  ;;  %v1856_v21 = vadd.f32 %v4169_v4, %v1855_v53 }
 0x348   : > { %v3132_v22 = vpop.eup %3131  ;;  %v2006_v23 = vadd.f32 %v3130_v49, %v2005_v50  ;;  %v2812_v17 = vmul.f32 -1.442695, %v1856_v21 }
 0x349   : > { %v3134_v27 = vpop.eup %3133  ;;  %v1932_v24 = vadd.f32 1.0, %v3132_v22 }
 0x34a   : > { %v2010_v30 = vsel %vm2009_vm2, %v3130_v49, %v2006_v23  ;;  %v2018_v31 = vmul.f32 %v3134_v27, %v1931_v42  ;;  %3135 = vpow2.f32 %v2812_v17  ;;  %vm2023_vm4 = vweird.f32 %v3134_v27 }
 0x34b   : > { %v2015_v33 = vsel %vm2012_vm3, %v2014_v28, %v2010_v30  ;;  %3137 = vrcp.f32 %v1932_v24  ;;  %vm2024_vm6 = vmor %vm2022_vm5, %vm2023_vm4  ;;  %v2043_v15 = vand.u32 2147483648, %v1932_v24  ;;  %v2041_v54 = vand.u32 2147483647, %v1932_v24 }
 0x34c   : > { %2186 = vst [vmem:[%s4200_s10 + $0x20] sm:$0xff] %v2015_v33  ;;  %v2019_v35 = vsub.f32 1.0, %v2018_v31  ;;  %vm2037_vm9 = vweird.f32 %v1932_v24 }
 0x34d   : > { %v1858_v37 = vpop.f32.mrf.mxu2  ;;  %v2044_v58 = vor.u32 1.1754944e-38, %v2043_v15  ;;  %vm2042_vm11 = vcmp.eq.f32.partialorder %v2041_v54, 8.507059e+37 }
 0x34e   : > { %v2020_v29 = vmul.f32 %v3134_v27, %v2019_v35  ;;  %v1859_v61 = vadd.f32 %v4169_v4, %v1858_v37 }
 0x350   : > { %v3136_v40 = vpop.eup %3135  ;;  %v2021_v41 = vadd.f32 %v3134_v27, %v2020_v29  ;;  %v2813_v60 = vmul.f32 -1.442695, %v1859_v61 }
 0x351   : > { %v3138_v43 = vpop.eup %3137  ;;  %v1933_v48 = vadd.f32 1.0, %v3136_v40 }
 0x352   : > { %v2025_v44 = vsel %vm2024_vm6, %v3134_v27, %v2021_v41  ;;  %v2033_v46 = vmul.f32 %v3138_v43, %v1932_v24  ;;  %3139 = vpow2.f32 %v2813_v60  ;;  %vm2038_vm8 = vweird.f32 %v3138_v43 }
 0x353   : > { %v2030_v39 = vsel %vm2027_vm7, %v2029_v12, %v2025_v44  ;;  %3141 = vrcp.f32 %v1933_v48  ;;  %vm2039_vm10 = vmor %vm2037_vm9, %vm2038_vm8  ;;  %v2058_v1 = vand.u32 2147483648, %v1933_v48  ;;  %v2056_v2 = vand.u32 2147483647, %v1933_v48 }
 0x354   : > { %2187 = vst [vmem:[%s4200_s10 + $0x28] sm:$0xff] %v2030_v39  ;;  %v2034_v47 = vsub.f32 1.0, %v2033_v46  ;;  %vm2052_vm13 = vweird.f32 %v1933_v48 }
 0x355   : > { %v1860_v51 = vpop.f32.mrf.mxu2  ;;  %v2059_v10 = vor.u32 1.1754944e-38, %v2058_v1  ;;  %vm2057_vm15 = vcmp.eq.f32.partialorder %v2056_v2, 8.507059e+37 }
 0x356   : > { %v2035_v20 = vmul.f32 %v3138_v43, %v2034_v47  ;;  %v1861_v55 = vadd.f32 %v4169_v4, %v1860_v51 }
 0x358   : > { %v3140_v19 = vpop.eup %3139  ;;  %v2036_v56 = vadd.f32 %v3138_v43, %v2035_v20  ;;  %v2814_v38 = vmul.f32 -1.442695, %v1861_v55 }
 0x359   : > { %v3142_v57 = vpop.eup %3141  ;;  %v1934_v59 = vadd.f32 1.0, %v3140_v19 }
 0x35a   : > { %v2040_v32 = vsel %vm2039_vm10, %v3138_v43, %v2036_v56  ;;  %v2048_v62 = vmul.f32 %v3142_v57, %v1933_v48  ;;  %3143 = vpow2.f32 %v2814_v38  ;;  %vm2053_vm12 = vweird.f32 %v3142_v57 }
 0x35b   : > { %v2045_v63 = vsel %vm2042_vm11, %v2044_v58, %v2040_v32  ;;  %3145 = vrcp.f32 %v1934_v59  ;;  %vm2054_vm14 = vmor %vm2052_vm13, %vm2053_vm12  ;;  %v2073_v45 = vand.u32 2147483648, %v1934_v59  ;;  %v2071_v14 = vand.u32 2147483647, %v1934_v59 }
 0x35c   : > { %2188 = vst [vmem:[%s4200_s10 + $0x30] sm:$0xff] %v2045_v63  ;;  %v2049_v18 = vsub.f32 1.0, %v2048_v62  ;;  %vm2067_vm1 = vweird.f32 %v1934_v59 }
 0x35d   : > { %v1863_v7 = vpop.f32.mrf.mxu2  ;;  %v2074_v23 = vor.u32 1.1754944e-38, %v2073_v45  ;;  %vm2072_vm3 = vcmp.eq.f32.partialorder %v2071_v14, 8.507059e+37 }
 0x35e   : > { %v2050_v26 = vmul.f32 %v3142_v57, %v2049_v18  ;;  %v1864_v3 = vadd.f32 %v4169_v4, %v1863_v7 }
 0x360   : > { %v3144_v5 = vpop.eup %3143  ;;  %v2051_v6 = vadd.f32 %v3142_v57, %v2050_v26  ;;  %v2815_v8 = vmul.f32 -1.442695, %v1864_v3 }
 0x361   : > { %v3146_v9 = vpop.eup %3145  ;;  %v1935_v11 = vadd.f32 1.0, %v3144_v5 }
 0x362   : > { %v2055_v49 = vsel %vm2054_vm14, %v3142_v57, %v2051_v6  ;;  %v2063_v25 = vmul.f32 %v3146_v9, %v1934_v59  ;;  %3147 = vpow2.f32 %v2815_v8  ;;  %vm2068_vm0 = vweird.f32 %v3146_v9 }
 0x363   : > { %v2060_v42 = vsel %vm2057_vm15, %v2059_v10, %v2055_v49  ;;  %3149 = vrcp.f32 %v1935_v11  ;;  %vm2069_vm2 = vmor %vm2067_vm1, %vm2068_vm0  ;;  %v2088_v31 = vand.u32 2147483648, %v1935_v11  ;;  %v2086_v36 = vand.u32 2147483647, %v1935_v11 }
 0x364   : > { %2189 = vst [vmem:[%s4200_s10 + $0x38] sm:$0xff] %v2060_v42  ;;  %v2064_v34 = vsub.f32 1.0, %v2063_v25  ;;  %vm2082_vm5 = vweird.f32 %v1935_v11 }
 0x365   : > { %v1865_v0 = vpop.f32.mrf.mxu2  ;;  %v2089_v41 = vor.u32 1.1754944e-38, %v2088_v31  ;;  %vm2087_vm7 = vcmp.eq.f32.partialorder %v2086_v36, 8.507059e+37 }
 0x366   : > { %v2065_v13 = vmul.f32 %v3146_v9, %v2064_v34  ;;  %v1866_v53 = vadd.f32 %v4169_v4, %v1865_v0 }
 0x368   : > { %v3148_v50 = vpop.eup %3147  ;;  %v2066_v16 = vadd.f32 %v3146_v9, %v2065_v13  ;;  %v2816_v21 = vmul.f32 -1.442695, %v1866_v53 }
 0x369   : > { %v3150_v22 = vpop.eup %3149  ;;  %v1936_v17 = vadd.f32 1.0, %v3148_v50 }
 0x36a   : > { %v2070_v27 = vsel %vm2069_vm2, %v3146_v9, %v2066_v16  ;;  %v2078_v28 = vmul.f32 %v3150_v22, %v1935_v11  ;;  %3151 = vpow2.f32 %v2816_v21  ;;  %vm2083_vm4 = vweird.f32 %v3150_v22 }
 0x36b   : > { %v2075_v24 = vsel %vm2072_vm3, %v2074_v23, %v2070_v27  ;;  %3153 = vrcp.f32 %v1936_v17  ;;  %vm2084_vm6 = vmor %vm2082_vm5, %vm2083_vm4  ;;  %v2103_v46 = vand.u32 2147483648, %v1936_v17  ;;  %v2101_v15 = vand.u32 2147483647, %v1936_v17 }
 0x36c   : > { %2190 = vst [vmem:[%s4200_s10 + $0x40] sm:$0xff] %v2075_v24  ;;  %v2079_v30 = vsub.f32 1.0, %v2078_v28  ;;  %vm2097_vm9 = vweird.f32 %v1936_v17 }
 0x36d   : > { %v1868_v33 = vpop.f32.mrf.mxu2  ;;  %v2104_v56 = vor.u32 1.1754944e-38, %v2103_v46  ;;  %vm2102_vm11 = vcmp.eq.f32.partialorder %v2101_v15, 8.507059e+37 }
 0x36e   : > { %v2080_v35 = vmul.f32 %v3150_v22, %v2079_v30  ;;  %v1869_v37 = vadd.f32 %v4169_v4, %v1868_v33 }
 0x370   : > { %v3152_v29 = vpop.eup %3151  ;;  %v2081_v52 = vadd.f32 %v3150_v22, %v2080_v35  ;;  %v2817_v61 = vmul.f32 -1.442695, %v1869_v37 }
 0x371   : > { %v3154_v40 = vpop.eup %3153  ;;  %v1937_v60 = vadd.f32 1.0, %v3152_v29 }
 0x372   : > { %v2085_v43 = vsel %vm2084_vm6, %v3150_v22, %v2081_v52  ;;  %v2093_v12 = vmul.f32 %v3154_v40, %v1936_v17  ;;  %3155 = vpow2.f32 %v2817_v61  ;;  %vm2098_vm8 = vweird.f32 %v3154_v40 }
 0x373   : > { %v2090_v48 = vsel %vm2087_vm7, %v2089_v41, %v2085_v43  ;;  %3157 = vrcp.f32 %v1937_v60  ;;  %vm2099_vm10 = vmor %vm2097_vm9, %vm2098_vm8  ;;  %v2118_v62 = vand.u32 2147483648, %v1937_v60  ;;  %v2116_v1 = vand.u32 2147483647, %v1937_v60 }
 0x374   : > { %2191 = vst [vmem:[%s4200_s10 + $0x48] sm:$0xff] %v2090_v48  ;;  %v2094_v44 = vsub.f32 1.0, %v2093_v12  ;;  %vm2112_vm13 = vweird.f32 %v1937_v60 }
 0x375   : > { %v1870_v39 = vpop.f32.mrf.mxu2  ;;  %v2119_v6 = vor.u32 1.1754944e-38, %v2118_v62  ;;  %vm2117_vm15 = vcmp.eq.f32.partialorder %v2116_v1, 8.507059e+37 }
 0x376   : > { %v2095_v47 = vmul.f32 %v3154_v40, %v2094_v44  ;;  %v1871_v51 = vadd.f32 %v4169_v4, %v1870_v39 }
 0x378   : > { %v3156_v20 = vpop.eup %3155  ;;  %v2096_v54 = vadd.f32 %v3154_v40, %v2095_v47  ;;  %v2818_v55 = vmul.f32 -1.442695, %v1871_v51 }
 0x379   : > { %v3158_v19 = vpop.eup %3157  ;;  %v1938_v38 = vadd.f32 1.0, %v3156_v20 }
 0x37a   : > { %v2100_v57 = vsel %vm2099_vm10, %v3154_v40, %v2096_v54  ;;  %v2108_v58 = vmul.f32 %v3158_v19, %v1937_v60  ;;  %3159 = vpow2.f32 %v2818_v55  ;;  %vm2113_vm12 = vweird.f32 %v3158_v19 }
 0x37b   : > { %v2105_v59 = vsel %vm2102_vm11, %v2104_v56, %v2100_v57  ;;  %3161 = vrcp.f32 %v1938_v38  ;;  %vm2114_vm14 = vmor %vm2112_vm13, %vm2113_vm12  ;;  %v2133_v25 = vand.u32 2147483648, %v1938_v38  ;;  %v2131_v45 = vand.u32 2147483647, %v1938_v38 }
 0x37c   : > { %2192 = vst [vmem:[%s4200_s10 + $0x50] sm:$0xff] %v2105_v59  ;;  %v2109_v32 = vsub.f32 1.0, %v2108_v58  ;;  %vm2127_vm1 = vweird.f32 %v1938_v38 }
 0x37d   : > { %v1873_v63 = vpop.f32.mrf.mxu2  ;;  %v2134_v16 = vor.u32 1.1754944e-38, %v2133_v25  ;;  %vm2132_vm3 = vcmp.eq.f32.partialorder %v2131_v45, 8.507059e+37 }
 0x37e   : > { %v2110_v18 = vmul.f32 %v3158_v19, %v2109_v32  ;;  %v1874_v7 = vadd.f32 %v4169_v4, %v1873_v63 }
 0x380   : > { %v3160_v26 = vpop.eup %3159  ;;  %v2111_v2 = vadd.f32 %v3158_v19, %v2110_v18  ;;  %v2819_v3 = vmul.f32 -1.442695, %v1874_v7 }
 0x381   : > { %v3162_v5 = vpop.eup %3161  ;;  %v1939_v8 = vadd.f32 1.0, %v3160_v26 }
 0x382   : > { %v2115_v9 = vsel %vm2114_vm14, %v3158_v19, %v2111_v2  ;;  %v2123_v10 = vmul.f32 %v3162_v5, %v1938_v38  ;;  %3163 = vpow2.f32 %v2819_v3  ;;  %vm2128_vm0 = vweird.f32 %v3162_v5 }
 0x383   : > { %v2120_v11 = vsel %vm2117_vm15, %v2119_v6, %v2115_v9  ;;  %3165 = vrcp.f32 %v1939_v8  ;;  %vm2129_vm2 = vmor %vm2127_vm1, %vm2128_vm0  ;;  %v2148_v28 = vand.u32 2147483648, %v1939_v8  ;;  %vm2142_vm5 = vweird.f32 %v1939_v8 }
 0x384   : > { %2193 = vst [vmem:[%s4200_s10 + $0x58] sm:$0xff] %v2120_v11  ;;  %v2124_v49 = vsub.f32 1.0, %v2123_v10 }
 0x385   : > { %v1875_v42 = vpop.f32.mrf.mxu2  ;;  %v2149_v35 = vor.u32 1.1754944e-38, %v2148_v28 }
 0x386   : > { %v2125_v34 = vmul.f32 %v3162_v5, %v2124_v49  ;;  %v1876_v0 = vadd.f32 %v4169_v4, %v1875_v42  ;;  %v2146_v4 = vand.u32 2147483647, %v1939_v8 }
 0x388   : > { %v3164_v13 = vpop.eup %3163  ;;  %v2126_v14 = vadd.f32 %v3162_v5, %v2125_v34  ;;  %v2820_v53 = vmul.f32 -1.442695, %v1876_v0  ;;  %vm2147_vm7 = vcmp.eq.f32.partialorder %v2146_v4, 8.507059e+37 }
 0x389   : > { %v3166_v50 = vpop.eup %3165  ;;  %v1940_v21 = vadd.f32 1.0, %v3164_v13 }
 0x38a   : > { %v2130_v22 = vsel %vm2129_vm2, %v3162_v5, %v2126_v14  ;;  %v2138_v23 = vmul.f32 %v3166_v50, %v1939_v8  ;;  %3167 = vpow2.f32 %v2820_v53  ;;  %vm2143_vm4 = vweird.f32 %v3166_v50 }
 0x38b   : > { %v2135_v17 = vsel %vm2132_vm3, %v2134_v16, %v2130_v22  ;;  %3169 = vrcp.f32 %v1940_v21  ;;  %vm2144_vm6 = vmor %vm2142_vm5, %vm2143_vm4  ;;  %v2163_v40 = vand.u32 2147483648, %v1940_v21  ;;  %v2161_v60 = vand.u32 2147483647, %v1940_v21 }
 0x38c   : > { %2194 = vst [vmem:[%s4200_s10 + $0x60] sm:$0xff] %v2135_v17  ;;  %v2139_v27 = vsub.f32 1.0, %v2138_v23  ;;  %vm2157_vm9 = vweird.f32 %v1940_v21 }
 0x38d   : > { %v2164_v48 = vor.u32 1.1754944e-38, %v2163_v40  ;;  %vm2162_vm11 = vcmp.eq.f32.partialorder %v2161_v60, 8.507059e+37 }
 0x38e   : > { %v2140_v24 = vmul.f32 %v3166_v50, %v2139_v27 }
 0x390   : > { %v3168_v30 = vpop.eup %3167  ;;  %v2141_v31 = vadd.f32 %v3166_v50, %v2140_v24 }
 0x391   : > { %v3170_v33 = vpop.eup %3169  ;;  %v1941_v36 = vadd.f32 1.0, %v3168_v30 }
 0x392   : > { %v2145_v37 = vsel %vm2144_vm6, %v3166_v50, %v2141_v31  ;;  %v2153_v29 = vmul.f32 %v3170_v33, %v1940_v21  ;;  %vm2158_vm8 = vweird.f32 %v3170_v33 }
 0x393   : > { %v2150_v52 = vsel %vm2147_vm7, %v2149_v35, %v2145_v37  ;;  %3171 = vrcp.f32 %v1941_v36  ;;  %vm2159_vm10 = vmor %vm2157_vm9, %vm2158_vm8  ;;  %v2178_v15 = vand.u32 2147483648, %v1941_v36  ;;  %v2176_v20 = vand.u32 2147483647, %v1941_v36 }
 0x394   : > { %2195 = vst [vmem:[%s4200_s10 + $0x68] sm:$0xff] %v2150_v52  ;;  %v2154_v61 = vsub.f32 1.0, %v2153_v29  ;;  %vm2172_vm13 = vweird.f32 %v1941_v36 }
 0x395   : > { %v2179_v55 = vor.u32 1.1754944e-38, %v2178_v15  ;;  %vm2177_vm15 = vcmp.eq.f32.partialorder %v2176_v20, 8.507059e+37 }
 0x396   : > { %v2155_v41 = vmul.f32 %v3170_v33, %v2154_v61 }
 0x398   : > { %v2156_v43 = vadd.f32 %v3170_v33, %v2155_v41 }
 0x399   : > { %v3172_v12 = vpop.eup %3171 }
 0x39a   : > { %v2160_v44 = vsel %vm2159_vm10, %v3170_v33, %v2156_v43  ;;  %v2168_v46 = vmul.f32 %v3172_v12, %v1941_v36  ;;  %vm2173_vm12 = vweird.f32 %v3172_v12 }
 0x39b   : > { %v2165_v39 = vsel %vm2162_vm11, %v2164_v48, %v2160_v44  ;;  %vm2174_vm14 = vmor %vm2172_vm13, %vm2173_vm12 }
 0x39c   : > { %2196 = vst [vmem:[%s4200_s10 + $0x70] sm:$0xff] %v2165_v39  ;;  %v2169_v47 = vsub.f32 1.0, %v2168_v46 }
 0x39e   : > { %v2170_v51 = vmul.f32 %v3172_v12, %v2169_v47 }
 0x3a0   : > { %v2171_v54 = vadd.f32 %v3172_v12, %v2170_v51 }
 0x3a2   : > { %v2175_v19 = vsel %vm2174_vm14, %v3172_v12, %v2171_v54 }
 0x3a3   : > { %v2180_v56 = vsel %vm2177_vm15, %v2179_v55, %v2175_v19 }
 0x3a4   : > { %2197 = vst [vmem:[%s4200_s10 + $0x78] sm:$0xff] %v2180_v56 }
 0x3a5   : > { %3528 = shalt.err (!%p3525_p6)
}
 0x3a6   : > { %s3606_s1 = smov 128   ;;  %s3607_s12 = smov 8  }
 0x3a7   : > { %2966 = dma.vmem_to_hbm [thread:$0]  (%p3778_p0), %s2249_s28, 2048, %s2251_s23, %s2231_s25, %s3606_s1, %s3606_s1, %s3607_s12  }
 0x3a8 PF: > { %s4352_s21 = sld [smem:[#allocation30_spill]]  ;;  %p4354_p11 = scmp.ge.s32.totalorder %s3591_s24, 2 }
 0x3aa   : > { %p3003_p12 = pnand %p4354_p11, %p3786_p5 }
 0x3ac   : > { %p3004_p3 = pneg %p3003_p12 }
 0x3ae   : > { %s2283_s10 = sand.u32 1, %s4352_s21  }
 0x3af   : > { %s2284_s20 = scalar_lea.sflag [#allocation4], %s2283_s10 }
 0x3b0   : > { %3570 = dma.done.wait (%p3004_p3), %s2284_s20, 2048  }
 0x3b1   : > { %3572 = vsyncadd (%p3004_p3), %s2284_s20, 4294965248  ;;  %s2294_s14 = scalar_lea.sflag [#allocation21], %s2283_s10 }
 0x3b2   : > { %3574 = dma.done.wait (%p3004_p3), %s2294_s14, 4096  }
 0x3b3   : > { %3576 = vsyncadd (%p3004_p3), %s2294_s14, 4294963200  ;;  %s4355_s24 = sld [smem:[#allocation32_spill]]  ;;  %s4358_s21 = smov %s3583_s22 }
 0x3b4   : > { %s4356_s29 = sld [smem:[#allocation31_spill]] }
 0x3b5   : > { %s4357_s23 = sld [smem:[#allocation33_spill]] }
 0x3b9   : > { %p40_p0 = scmp.ge.s32.totalorder %s4355_s24, 4  }
 0x3ba   : > { %s4359_s22 = smov %s4356_s29 }
 0x3bb   :  { %42 = sbr.rel (!%p40_p0) target bundleno = 25 (0x19), region = 194 }
 0x3c0   :  { %2300 = vsyncpa [#allocation3], 1 }
 0x3c1   :  { %2302 = vsyncpa [#allocation3 + $0x1], 1 }
 0x3c2   :  { %2303 = vsyncpa [#allocation6], 1 }
 0x3c3   :  { %2305 = vsyncpa [#allocation6 + $0x1], 1 }
 0x3c4   :  { %2306 = vsyncpa [#allocation9], 1 }
 0x3c5   :  { %2307 = vsyncpa [#allocation12], 1 }
 0x3c6   :  { %2308 = vsyncpa [#allocation15], 1 }
 0x3c7   :  { %2309 = vsyncpa [#allocation18], 1 }
 0x3c8   :  { %2310 = vsyncpa [#allocation4], 1 }
 0x3c9   :  { %2312 = vsyncpa [#allocation4 + $0x1], 1 }
 0x3ca   :  { %2313 = vsyncpa [#allocation21], 1 }
 0x3cb   :  { %2315 = vsyncpa [#allocation21 + $0x1], 1 }

</bundles_post_ra>
